<compile_context>
chip_gen: v5e
topology: v5e:2x2
jax: 0.10.0
libtpu: 0.0.40
codegen_flags: <defaults>
</compile_context>

<pallas_src>
import functools
import math

import jax
import jax.numpy as jnp
from jax import lax
from jax.experimental import pallas as pl
from jax.experimental.pallas import tpu as pltpu


# ---------------------------------------------------------------------------
# Kernel: one (n, do) output depth-slice per grid step.
#   refs = (x_slab_kd0, ..., x_slab_kd{K-1}, w, bias, out)
#   acc(f32) = bias ; acc += sum_{kd,kh,kw} shift(x)[rows, Cin] @ w[tap][Cin, Cout_p]
#   y = act(acc) ; y = PixelNorm(y) ; out = y
# ---------------------------------------------------------------------------
def convblock_kernel(*refs, K, Ho, Wo, Cin, inv_cout, act, norm):
    x_refs = refs[:K]
    w_ref, b_ref, o_ref = refs[K], refs[K + 1], refs[K + 2]
    cout_p = o_ref.shape[-1]
    rows = Ho * Wo

    # Bias folded into the accumulator init (no separate epilogue add).
    acc = jnp.broadcast_to(b_ref[...], (rows, cout_p)).astype(jnp.float32)

    for kd in range(K):
        slab = x_refs[kd][0, 0]                         # (Hp, Wp, Cin), compute dtype
        for kh in range(K):
            for kw in range(K):
                xs = slab[kh:kh + Ho, kw:kw + Wo, :].reshape(rows, Cin)
                w_tap = w_ref[kd * K * K + kh * K + kw]  # (Cin, Cout_p), static index
                acc = acc + jnp.dot(xs, w_tap, preferred_element_type=jnp.float32)

    y = acc
    if act == "lrelu":
        y = jnp.where(y > 0, y, 0.2 * y)
    elif act == "tanh":
        y = jnp.tanh(y)
    if norm:
        # Padded Cout lanes are exactly zero (zero weight cols + zero bias), so the sum over
        # the padded width equals the sum over true channels; divide by the TRUE Cout.
        ss = jnp.sum(y * y, axis=-1, keepdims=True)
        y = y * lax.rsqrt(ss * inv_cout + 1e-8)

    o_ref[0, 0] = y.astype(o_ref.dtype)


def _block_bytes(shape, dtype):
    """Rough VMEM footprint of a block (lane/sublane padded)."""
    s = list(shape)
    if len(s) >= 1:
        s[-1] = pl.cdiv(s[-1], 128) * 128
    if len(s) >= 2:
        s[-2] = pl.cdiv(s[-2], 8) * 8
    return int(math.prod(s)) * jnp.dtype(dtype).itemsize


# ---------------------------------------------------------------------------
# Wrapper
# ---------------------------------------------------------------------------
def conv_block_forward(x, weight, bias, *, stride=1, padding=1, act="lrelu", norm=True,
                       compute_dtype=jnp.bfloat16, out_dtype=jnp.float32,
                       channels_last_out=False, lane=128):
    """x: (N, Cin, D, H, W) NCDHW.  Returns NCDHW (default) or NDHWC in out_dtype."""
    N, Cin, D, H, W = x.shape
    Cout, Cin_w, K, _, _ = weight.shape
    assert Cin_w == Cin
    assert stride == 1, "TODO(synk): fused shifted-GEMM path implemented for stride=1 only"
    scale = math.sqrt(2.0) / math.sqrt(Cin)

    Dp, Hp, Wp = D + 2 * padding, H + 2 * padding, W + 2 * padding
    Do, Ho, Wo = Dp - K + 1, Hp - K + 1, Wp - K + 1
    rows = Ho * Wo
    Cout_p = pl.cdiv(Cout, lane) * lane

    # Channels-last padded input (single pad/transpose pass; cast early to halve HBM bytes).
    x_cl = jnp.transpose(x, (0, 2, 3, 4, 1)).astype(compute_dtype)
    x_pad = jnp.pad(x_cl, ((0, 0), (padding, padding), (padding, padding),
                           (padding, padding), (0, 0)))

    # torch: conv3d(x, weight*scale, bias) -> fold scale, reorder taps to (K^3, Cin, Cout_p).
    w = (weight.astype(jnp.float32) * scale).transpose(2, 3, 4, 1, 0).reshape(K * K * K, Cin, Cout)
    w = jnp.pad(w, ((0, 0), (0, 0), (0, Cout_p - Cout))).astype(compute_dtype)
    b2d = jnp.pad(bias.astype(jnp.float32), (0, Cout_p - Cout)).reshape(1, Cout_p)

    # One 5-D slab block per depth tap kd: block index along the padded-depth axis is
    # (do + kd) because the block size there is 1 (block index == element offset).
    def make_x_spec(kd):
        return pl.BlockSpec((1, 1, Hp, Wp, Cin), lambda n, do: (n, do + kd, 0, 0, 0))

    in_specs = [make_x_spec(kd) for kd in range(K)] + [
        pl.BlockSpec((K * K * K, Cin, Cout_p), lambda n, do: (0, 0, 0)),  # weight: VMEM-resident
        pl.BlockSpec((1, Cout_p), lambda n, do: (0, 0)),                  # bias:   VMEM-resident
    ]
    out_spec = pl.BlockSpec((1, 1, rows, Cout_p), lambda n, do: (n, do, 0, 0))

    grid = (N, Do)

    vmem_bytes = int(
        2 * K * _block_bytes((1, 1, Hp, Wp, Cin), compute_dtype)   # K double-buffered slabs
        + 2 * _block_bytes(w.shape, compute_dtype)                 # resident weight
        + 2 * _block_bytes(b2d.shape, jnp.float32)                 # resident bias
        + 2 * _block_bytes((1, 1, rows, Cout_p), out_dtype)        # output block
        + (8 << 20))                                               # Mosaic scratch headroom
    vmem_bytes = min(vmem_bytes, 64 << 20)                         # keep inside v7x VMEM

    kernel = functools.partial(convblock_kernel, K=K, Ho=Ho, Wo=Wo, Cin=Cin,
                               inv_cout=1.0 / Cout, act=act, norm=norm)

    out = pl.pallas_call(
        kernel,
        out_shape=jax.ShapeDtypeStruct((N, Do, rows, Cout_p), out_dtype),
        grid_spec=pltpu.PrefetchScalarGridSpec(
            num_scalar_prefetch=0,
            grid=grid,
            in_specs=in_specs,
            out_specs=out_spec,
        ),
        compiler_params=pltpu.CompilerParams(
            dimension_semantics=("parallel", "parallel"),
            vmem_limit_bytes=vmem_bytes,
        ),
    )(*([x_pad] * K), w, b2d)

    out = out[..., :Cout].reshape(N, Do, Ho, Wo, Cout)
    if channels_last_out:
        return out                         # NDHWC (feeds the next ConvBlock with no transpose)
    return out.transpose(0, 4, 1, 2, 3)    # NCDHW (module semantics)


# ---------------------------------------------------------------------------
# Pure-JAX reference (mirrors the PyTorch forward; takes the pre-scaled weight).
# ---------------------------------------------------------------------------
def conv_block_reference(x, weight_eff, bias, *, stride, padding, act="lrelu", norm=True):
    out = lax.conv_general_dilated(
        x.astype(jnp.float32), weight_eff.astype(jnp.float32),
        window_strides=(stride, stride, stride),
        padding=[(padding, padding)] * 3,
        dimension_numbers=("NCDHW", "OIDHW", "NCDHW"),
        precision=lax.Precision.HIGHEST,
    ) + bias.reshape(1, -1, 1, 1, 1)
    if act == "lrelu":
        out = jnp.where(out > 0, out, 0.2 * out)
    elif act == "tanh":
        out = jnp.tanh(out)
    if norm:
        out = out * lax.rsqrt(jnp.mean(out ** 2, axis=1, keepdims=True) + 1e-8)
    return out


if __name__ == "__main__":
    # ConvBlock(in_channels=4, out_channels=8, kernel_size=3, stride=1, padding=1,
    #           act='lrelu', norm=True)
    N, Cin, Cout, K = 2, 4, 8, 3
    D = H = W = 8
    stride, padding = 1, 1

    key = jax.random.PRNGKey(0)
    kx, kw, kb = jax.random.split(key, 3)
    x = jax.random.normal(kx, (N, Cin, D, H, W), dtype=jnp.float32)
    weight = jax.random.normal(kw, (Cout, Cin, K, K, K), dtype=jnp.float32)   # torch.randn
    bias = 0.1 * jax.random.normal(kb, (Cout,), dtype=jnp.float32)            # exercise bias path

    scale = math.sqrt(2.0) / math.sqrt(Cin)

    # 1) f32 compute path: tight check against the f32 reference.
    ref32 = conv_block_reference(x, weight * scale, bias, stride=stride, padding=padding)
    out32 = conv_block_forward(x, weight, bias, stride=stride, padding=padding,
                               compute_dtype=jnp.float32)
    out32 = jax.block_until_ready(out32)
    assert out32.shape == ref32.shape == (N, Cout, D, H, W)
    assert jnp.allclose(out32, ref32, rtol=1e-3, atol=1e-3), \
        float(jnp.max(jnp.abs(out32 - ref32)))

    # 2) bf16 compute path (optimized default): compare against a reference computed from
    #    identically bf16-rounded inputs, so only f32 accumulation-order differences remain.
    x_q = x.astype(jnp.bfloat16).astype(jnp.float32)
    w_q = (weight * scale).astype(jnp.bfloat16).astype(jnp.float32)
    ref_bf = conv_block_reference(x_q, w_q, bias, stride=stride, padding=padding)
    out_bf = conv_block_forward(x, weight, bias, stride=stride, padding=padding)
    out_bf = jax.block_until_ready(out_bf)
    assert out_bf.shape == ref_bf.shape
    assert jnp.allclose(out_bf, ref_bf, rtol=1e-2, atol=1e-2), \
        float(jnp.max(jnp.abs(out_bf - ref_bf)))

    print("KERNEL_OK")
</pallas_src>

<mosaic_0001>
module attributes {stable_mosaic.version = 11 : i64} {
  func.func @convblock_kernel(%arg0: i32, %arg1: i32, %arg2: memref<1x1x10x10x4xf32, #tpu.memory_space<vmem>>, %arg3: memref<1x1x10x10x4xf32, #tpu.memory_space<vmem>>, %arg4: memref<1x1x10x10x4xf32, #tpu.memory_space<vmem>>, %arg5: memref<27x4x128xf32, #tpu.memory_space<vmem>>, %arg6: memref<1x128xf32, #tpu.memory_space<vmem>>, %arg7: memref<1x1x64x128xf32, #tpu.memory_space<vmem>>) attributes {dimension_semantics = [#tpu.dimension_semantics<parallel>, #tpu.dimension_semantics<parallel>], iteration_bounds = array<i64: 2, 8>, scalar_prefetch = 0 : i64, scratch_operands = 0 : i64, tpu.core_type = #tpu.core_type<tc>, window_params = [{transform_indices = @transform_0, window_bounds = array<i64: 1, 1, 10, 10, 4>}, {transform_indices = @transform_1, window_bounds = array<i64: 1, 1, 10, 10, 4>}, {transform_indices = @transform_2, window_bounds = array<i64: 1, 1, 10, 10, 4>}, {pipeline_mode = #tpu.pipeline_mode<synchronous>, transform_indices = @transform_3, window_bounds = array<i64: 27, 4, 128>}, {pipeline_mode = #tpu.pipeline_mode<synchronous>, transform_indices = @transform_4, window_bounds = array<i64: 1, 128>}, {transform_indices = @transform_5, window_bounds = array<i64: 1, 1, 64, 128>}]} {
    %c0 = arith.constant 0 : index
    %c0_0 = arith.constant 0 : index
    %0 = vector.load %arg6[%c0, %c0_0] : memref<1x128xf32, #tpu.memory_space<vmem>>, vector<1x128xf32>
    %1 = vector.shape_cast %0 : vector<1x128xf32> to vector<1x128xf32>
    %2 = vector.broadcast %1 : vector<1x128xf32> to vector<64x128xf32>
    %c0_1 = arith.constant 0 : index
    %c0_2 = arith.constant 0 : index
    %c0_3 = arith.constant 0 : index
    %c0_4 = arith.constant 0 : index
    %c0_5 = arith.constant 0 : index
    %3 = vector.load %arg2[%c0_1, %c0_2, %c0_3, %c0_4, %c0_5] : memref<1x1x10x10x4xf32, #tpu.memory_space<vmem>>, vector<1x1x10x10x4xf32>
    %4 = vector.shape_cast %3 : vector<1x1x10x10x4xf32> to vector<10x10x4xf32>
    %5 = vector.extract_strided_slice %4 {offsets = [0, 0, 0], sizes = [8, 8, 4], strides = [1, 1, 1]} : vector<10x10x4xf32> to vector<8x8x4xf32>
    %6 = vector.shape_cast %5 : vector<8x8x4xf32> to vector<64x4xf32>
    %c0_6 = arith.constant 0 : index
    %c0_7 = arith.constant 0 : index
    %c0_8 = arith.constant 0 : index
    %7 = vector.load %arg5[%c0_6, %c0_7, %c0_8] : memref<27x4x128xf32, #tpu.memory_space<vmem>>, vector<1x4x128xf32>
    %8 = vector.shape_cast %7 : vector<1x4x128xf32> to vector<4x128xf32>
    %cst = arith.constant dense<0.000000e+00> : vector<64x128xf32>
    %9 = tpu.matmul %6, %8, %cst {dimension_numbers = #tpu.dot_dimension_numbers<[1], [0], [0], [1], [0, 0, 1, 1], [], []>} : vector<64x4xf32>, vector<4x128xf32>, vector<64x128xf32> -> vector<64x128xf32>
    %10 = arith.addf %2, %9 : vector<64x128xf32>
    %11 = vector.extract_strided_slice %4 {offsets = [0, 1, 0], sizes = [8, 8, 4], strides = [1, 1, 1]} : vector<10x10x4xf32> to vector<8x8x4xf32>
    %12 = vector.shape_cast %11 : vector<8x8x4xf32> to vector<64x4xf32>
    %c1 = arith.constant 1 : index
    %c0_9 = arith.constant 0 : index
    %c0_10 = arith.constant 0 : index
    %13 = vector.load %arg5[%c1, %c0_9, %c0_10] : memref<27x4x128xf32, #tpu.memory_space<vmem>>, vector<1x4x128xf32>
    %14 = vector.shape_cast %13 : vector<1x4x128xf32> to vector<4x128xf32>
    %cst_11 = arith.constant dense<0.000000e+00> : vector<64x128xf32>
    %15 = tpu.matmul %12, %14, %cst_11 {dimension_numbers = #tpu.dot_dimension_numbers<[1], [0], [0], [1], [0, 0, 1, 1], [], []>} : vector<64x4xf32>, vector<4x128xf32>, vector<64x128xf32> -> vector<64x128xf32>
    %16 = arith.addf %10, %15 : vector<64x128xf32>
    %17 = vector.extract_strided_slice %4 {offsets = [0, 2, 0], sizes = [8, 8, 4], strides = [1, 1, 1]} : vector<10x10x4xf32> to vector<8x8x4xf32>
    %18 = vector.shape_cast %17 : vector<8x8x4xf32> to vector<64x4xf32>
    %c2 = arith.constant 2 : index
    %c0_12 = arith.constant 0 : index
    %c0_13 = arith.constant 0 : index
    %19 = vector.load %arg5[%c2, %c0_12, %c0_13] : memref<27x4x128xf32, #tpu.memory_space<vmem>>, vector<1x4x128xf32>
    %20 = vector.shape_cast %19 : vector<1x4x128xf32> to vector<4x128xf32>
    %cst_14 = arith.constant dense<0.000000e+00> : vector<64x128xf32>
    %21 = tpu.matmul %18, %20, %cst_14 {dimension_numbers = #tpu.dot_dimension_numbers<[1], [0], [0], [1], [0, 0, 1, 1], [], []>} : vector<64x4xf32>, vector<4x128xf32>, vector<64x128xf32> -> vector<64x128xf32>
    %22 = arith.addf %16, %21 : vector<64x128xf32>
    %23 = vector.extract_strided_slice %4 {offsets = [1, 0, 0], sizes = [8, 8, 4], strides = [1, 1, 1]} : vector<10x10x4xf32> to vector<8x8x4xf32>
    %24 = vector.shape_cast %23 : vector<8x8x4xf32> to vector<64x4xf32>
    %c3 = arith.constant 3 : index
    %c0_15 = arith.constant 0 : index
    %c0_16 = arith.constant 0 : index
    %25 = vector.load %arg5[%c3, %c0_15, %c0_16] : memref<27x4x128xf32, #tpu.memory_space<vmem>>, vector<1x4x128xf32>
    %26 = vector.shape_cast %25 : vector<1x4x128xf32> to vector<4x128xf32>
    %cst_17 = arith.constant dense<0.000000e+00> : vector<64x128xf32>
    %27 = tpu.matmul %24, %26, %cst_17 {dimension_numbers = #tpu.dot_dimension_numbers<[1], [0], [0], [1], [0, 0, 1, 1], [], []>} : vector<64x4xf32>, vector<4x128xf32>, vector<64x128xf32> -> vector<64x128xf32>
    %28 = arith.addf %22, %27 : vector<64x128xf32>
    %29 = vector.extract_strided_slice %4 {offsets = [1, 1, 0], sizes = [8, 8, 4], strides = [1, 1, 1]} : vector<10x10x4xf32> to vector<8x8x4xf32>
    %30 = vector.shape_cast %29 : vector<8x8x4xf32> to vector<64x4xf32>
    %c4 = arith.constant 4 : index
    %c0_18 = arith.constant 0 : index
    %c0_19 = arith.constant 0 : index
    %31 = vector.load %arg5[%c4, %c0_18, %c0_19] : memref<27x4x128xf32, #tpu.memory_space<vmem>>, vector<1x4x128xf32>
    %32 = vector.shape_cast %31 : vector<1x4x128xf32> to vector<4x128xf32>
    %cst_20 = arith.constant dense<0.000000e+00> : vector<64x128xf32>
    %33 = tpu.matmul %30, %32, %cst_20 {dimension_numbers = #tpu.dot_dimension_numbers<[1], [0], [0], [1], [0, 0, 1, 1], [], []>} : vector<64x4xf32>, vector<4x128xf32>, vector<64x128xf32> -> vector<64x128xf32>
    %34 = arith.addf %28, %33 : vector<64x128xf32>
    %35 = vector.extract_strided_slice %4 {offsets = [1, 2, 0], sizes = [8, 8, 4], strides = [1, 1, 1]} : vector<10x10x4xf32> to vector<8x8x4xf32>
    %36 = vector.shape_cast %35 : vector<8x8x4xf32> to vector<64x4xf32>
    %c5 = arith.constant 5 : index
    %c0_21 = arith.constant 0 : index
    %c0_22 = arith.constant 0 : index
    %37 = vector.load %arg5[%c5, %c0_21, %c0_22] : memref<27x4x128xf32, #tpu.memory_space<vmem>>, vector<1x4x128xf32>
    %38 = vector.shape_cast %37 : vector<1x4x128xf32> to vector<4x128xf32>
    %cst_23 = arith.constant dense<0.000000e+00> : vector<64x128xf32>
    %39 = tpu.matmul %36, %38, %cst_23 {dimension_numbers = #tpu.dot_dimension_numbers<[1], [0], [0], [1], [0, 0, 1, 1], [], []>} : vector<64x4xf32>, vector<4x128xf32>, vector<64x128xf32> -> vector<64x128xf32>
    %40 = arith.addf %34, %39 : vector<64x128xf32>
    %41 = vector.extract_strided_slice %4 {offsets = [2, 0, 0], sizes = [8, 8, 4], strides = [1, 1, 1]} : vector<10x10x4xf32> to vector<8x8x4xf32>
    %42 = vector.shape_cast %41 : vector<8x8x4xf32> to vector<64x4xf32>
    %c6 = arith.constant 6 : index
    %c0_24 = arith.constant 0 : index
    %c0_25 = arith.constant 0 : index
    %43 = vector.load %arg5[%c6, %c0_24, %c0_25] : memref<27x4x128xf32, #tpu.memory_space<vmem>>, vector<1x4x128xf32>
    %44 = vector.shape_cast %43 : vector<1x4x128xf32> to vector<4x128xf32>
    %cst_26 = arith.constant dense<0.000000e+00> : vector<64x128xf32>
    %45 = tpu.matmul %42, %44, %cst_26 {dimension_numbers = #tpu.dot_dimension_numbers<[1], [0], [0], [1], [0, 0, 1, 1], [], []>} : vector<64x4xf32>, vector<4x128xf32>, vector<64x128xf32> -> vector<64x128xf32>
    %46 = arith.addf %40, %45 : vector<64x128xf32>
    %47 = vector.extract_strided_slice %4 {offsets = [2, 1, 0], sizes = [8, 8, 4], strides = [1, 1, 1]} : vector<10x10x4xf32> to vector<8x8x4xf32>
    %48 = vector.shape_cast %47 : vector<8x8x4xf32> to vector<64x4xf32>
    %c7 = arith.constant 7 : index
    %c0_27 = arith.constant 0 : index
    %c0_28 = arith.constant 0 : index
    %49 = vector.load %arg5[%c7, %c0_27, %c0_28] : memref<27x4x128xf32, #tpu.memory_space<vmem>>, vector<1x4x128xf32>
    %50 = vector.shape_cast %49 : vector<1x4x128xf32> to vector<4x128xf32>
    %cst_29 = arith.constant dense<0.000000e+00> : vector<64x128xf32>
    %51 = tpu.matmul %48, %50, %cst_29 {dimension_numbers = #tpu.dot_dimension_numbers<[1], [0], [0], [1], [0, 0, 1, 1], [], []>} : vector<64x4xf32>, vector<4x128xf32>, vector<64x128xf32> -> vector<64x128xf32>
    %52 = arith.addf %46, %51 : vector<64x128xf32>
    %53 = vector.extract_strided_slice %4 {offsets = [2, 2, 0], sizes = [8, 8, 4], strides = [1, 1, 1]} : vector<10x10x4xf32> to vector<8x8x4xf32>
    %54 = vector.shape_cast %53 : vector<8x8x4xf32> to vector<64x4xf32>
    %c8 = arith.constant 8 : index
    %c0_30 = arith.constant 0 : index
    %c0_31 = arith.constant 0 : index
    %55 = vector.load %arg5[%c8, %c0_30, %c0_31] : memref<27x4x128xf32, #tpu.memory_space<vmem>>, vector<1x4x128xf32>
    %56 = vector.shape_cast %55 : vector<1x4x128xf32> to vector<4x128xf32>
    %cst_32 = arith.constant dense<0.000000e+00> : vector<64x128xf32>
    %57 = tpu.matmul %54, %56, %cst_32 {dimension_numbers = #tpu.dot_dimension_numbers<[1], [0], [0], [1], [0, 0, 1, 1], [], []>} : vector<64x4xf32>, vector<4x128xf32>, vector<64x128xf32> -> vector<64x128xf32>
    %58 = arith.addf %52, %57 : vector<64x128xf32>
    %c0_33 = arith.constant 0 : index
    %c0_34 = arith.constant 0 : index
    %c0_35 = arith.constant 0 : index
    %c0_36 = arith.constant 0 : index
    %c0_37 = arith.constant 0 : index
    %59 = vector.load %arg3[%c0_33, %c0_34, %c0_35, %c0_36, %c0_37] : memref<1x1x10x10x4xf32, #tpu.memory_space<vmem>>, vector<1x1x10x10x4xf32>
    %60 = vector.shape_cast %59 : vector<1x1x10x10x4xf32> to vector<10x10x4xf32>
    %61 = vector.extract_strided_slice %60 {offsets = [0, 0, 0], sizes = [8, 8, 4], strides = [1, 1, 1]} : vector<10x10x4xf32> to vector<8x8x4xf32>
    %62 = vector.shape_cast %61 : vector<8x8x4xf32> to vector<64x4xf32>
    %c9 = arith.constant 9 : index
    %c0_38 = arith.constant 0 : index
    %c0_39 = arith.constant 0 : index
    %63 = vector.load %arg5[%c9, %c0_38, %c0_39] : memref<27x4x128xf32, #tpu.memory_space<vmem>>, vector<1x4x128xf32>
    %64 = vector.shape_cast %63 : vector<1x4x128xf32> to vector<4x128xf32>
    %cst_40 = arith.constant dense<0.000000e+00> : vector<64x128xf32>
    %65 = tpu.matmul %62, %64, %cst_40 {dimension_numbers = #tpu.dot_dimension_numbers<[1], [0], [0], [1], [0, 0, 1, 1], [], []>} : vector<64x4xf32>, vector<4x128xf32>, vector<64x128xf32> -> vector<64x128xf32>
    %66 = arith.addf %58, %65 : vector<64x128xf32>
    %67 = vector.extract_strided_slice %60 {offsets = [0, 1, 0], sizes = [8, 8, 4], strides = [1, 1, 1]} : vector<10x10x4xf32> to vector<8x8x4xf32>
    %68 = vector.shape_cast %67 : vector<8x8x4xf32> to vector<64x4xf32>
    %c10 = arith.constant 10 : index
    %c0_41 = arith.constant 0 : index
    %c0_42 = arith.constant 0 : index
    %69 = vector.load %arg5[%c10, %c0_41, %c0_42] : memref<27x4x128xf32, #tpu.memory_space<vmem>>, vector<1x4x128xf32>
    %70 = vector.shape_cast %69 : vector<1x4x128xf32> to vector<4x128xf32>
    %cst_43 = arith.constant dense<0.000000e+00> : vector<64x128xf32>
    %71 = tpu.matmul %68, %70, %cst_43 {dimension_numbers = #tpu.dot_dimension_numbers<[1], [0], [0], [1], [0, 0, 1, 1], [], []>} : vector<64x4xf32>, vector<4x128xf32>, vector<64x128xf32> -> vector<64x128xf32>
    %72 = arith.addf %66, %71 : vector<64x128xf32>
    %73 = vector.extract_strided_slice %60 {offsets = [0, 2, 0], sizes = [8, 8, 4], strides = [1, 1, 1]} : vector<10x10x4xf32> to vector<8x8x4xf32>
    %74 = vector.shape_cast %73 : vector<8x8x4xf32> to vector<64x4xf32>
    %c11 = arith.constant 11 : index
    %c0_44 = arith.constant 0 : index
    %c0_45 = arith.constant 0 : index
    %75 = vector.load %arg5[%c11, %c0_44, %c0_45] : memref<27x4x128xf32, #tpu.memory_space<vmem>>, vector<1x4x128xf32>
    %76 = vector.shape_cast %75 : vector<1x4x128xf32> to vector<4x128xf32>
    %cst_46 = arith.constant dense<0.000000e+00> : vector<64x128xf32>
    %77 = tpu.matmul %74, %76, %cst_46 {dimension_numbers = #tpu.dot_dimension_numbers<[1], [0], [0], [1], [0, 0, 1, 1], [], []>} : vector<64x4xf32>, vector<4x128xf32>, vector<64x128xf32> -> vector<64x128xf32>
    %78 = arith.addf %72, %77 : vector<64x128xf32>
    %79 = vector.extract_strided_slice %60 {offsets = [1, 0, 0], sizes = [8, 8, 4], strides = [1, 1, 1]} : vector<10x10x4xf32> to vector<8x8x4xf32>
    %80 = vector.shape_cast %79 : vector<8x8x4xf32> to vector<64x4xf32>
    %c12 = arith.constant 12 : index
    %c0_47 = arith.constant 0 : index
    %c0_48 = arith.constant 0 : index
    %81 = vector.load %arg5[%c12, %c0_47, %c0_48] : memref<27x4x128xf32, #tpu.memory_space<vmem>>, vector<1x4x128xf32>
    %82 = vector.shape_cast %81 : vector<1x4x128xf32> to vector<4x128xf32>
    %cst_49 = arith.constant dense<0.000000e+00> : vector<64x128xf32>
    %83 = tpu.matmul %80, %82, %cst_49 {dimension_numbers = #tpu.dot_dimension_numbers<[1], [0], [0], [1], [0, 0, 1, 1], [], []>} : vector<64x4xf32>, vector<4x128xf32>, vector<64x128xf32> -> vector<64x128xf32>
    %84 = arith.addf %78, %83 : vector<64x128xf32>
    %85 = vector.extract_strided_slice %60 {offsets = [1, 1, 0], sizes = [8, 8, 4], strides = [1, 1, 1]} : vector<10x10x4xf32> to vector<8x8x4xf32>
    %86 = vector.shape_cast %85 : vector<8x8x4xf32> to vector<64x4xf32>
    %c13 = arith.constant 13 : index
    %c0_50 = arith.constant 0 : index
    %c0_51 = arith.constant 0 : index
    %87 = vector.load %arg5[%c13, %c0_50, %c0_51] : memref<27x4x128xf32, #tpu.memory_space<vmem>>, vector<1x4x128xf32>
    %88 = vector.shape_cast %87 : vector<1x4x128xf32> to vector<4x128xf32>
    %cst_52 = arith.constant dense<0.000000e+00> : vector<64x128xf32>
    %89 = tpu.matmul %86, %88, %cst_52 {dimension_numbers = #tpu.dot_dimension_numbers<[1], [0], [0], [1], [0, 0, 1, 1], [], []>} : vector<64x4xf32>, vector<4x128xf32>, vector<64x128xf32> -> vector<64x128xf32>
    %90 = arith.addf %84, %89 : vector<64x128xf32>
    %91 = vector.extract_strided_slice %60 {offsets = [1, 2, 0], sizes = [8, 8, 4], strides = [1, 1, 1]} : vector<10x10x4xf32> to vector<8x8x4xf32>
    %92 = vector.shape_cast %91 : vector<8x8x4xf32> to vector<64x4xf32>
    %c14 = arith.constant 14 : index
    %c0_53 = arith.constant 0 : index
    %c0_54 = arith.constant 0 : index
    %93 = vector.load %arg5[%c14, %c0_53, %c0_54] : memref<27x4x128xf32, #tpu.memory_space<vmem>>, vector<1x4x128xf32>
    %94 = vector.shape_cast %93 : vector<1x4x128xf32> to vector<4x128xf32>
    %cst_55 = arith.constant dense<0.000000e+00> : vector<64x128xf32>
    %95 = tpu.matmul %92, %94, %cst_55 {dimension_numbers = #tpu.dot_dimension_numbers<[1], [0], [0], [1], [0, 0, 1, 1], [], []>} : vector<64x4xf32>, vector<4x128xf32>, vector<64x128xf32> -> vector<64x128xf32>
    %96 = arith.addf %90, %95 : vector<64x128xf32>
    %97 = vector.extract_strided_slice %60 {offsets = [2, 0, 0], sizes = [8, 8, 4], strides = [1, 1, 1]} : vector<10x10x4xf32> to vector<8x8x4xf32>
    %98 = vector.shape_cast %97 : vector<8x8x4xf32> to vector<64x4xf32>
    %c15 = arith.constant 15 : index
    %c0_56 = arith.constant 0 : index
    %c0_57 = arith.constant 0 : index
    %99 = vector.load %arg5[%c15, %c0_56, %c0_57] : memref<27x4x128xf32, #tpu.memory_space<vmem>>, vector<1x4x128xf32>
    %100 = vector.shape_cast %99 : vector<1x4x128xf32> to vector<4x128xf32>
    %cst_58 = arith.constant dense<0.000000e+00> : vector<64x128xf32>
    %101 = tpu.matmul %98, %100, %cst_58 {dimension_numbers = #tpu.dot_dimension_numbers<[1], [0], [0], [1], [0, 0, 1, 1], [], []>} : vector<64x4xf32>, vector<4x128xf32>, vector<64x128xf32> -> vector<64x128xf32>
    %102 = arith.addf %96, %101 : vector<64x128xf32>
    %103 = vector.extract_strided_slice %60 {offsets = [2, 1, 0], sizes = [8, 8, 4], strides = [1, 1, 1]} : vector<10x10x4xf32> to vector<8x8x4xf32>
    %104 = vector.shape_cast %103 : vector<8x8x4xf32> to vector<64x4xf32>
    %c16 = arith.constant 16 : index
    %c0_59 = arith.constant 0 : index
    %c0_60 = arith.constant 0 : index
    %105 = vector.load %arg5[%c16, %c0_59, %c0_60] : memref<27x4x128xf32, #tpu.memory_space<vmem>>, vector<1x4x128xf32>
    %106 = vector.shape_cast %105 : vector<1x4x128xf32> to vector<4x128xf32>
    %cst_61 = arith.constant dense<0.000000e+00> : vector<64x128xf32>
    %107 = tpu.matmul %104, %106, %cst_61 {dimension_numbers = #tpu.dot_dimension_numbers<[1], [0], [0], [1], [0, 0, 1, 1], [], []>} : vector<64x4xf32>, vector<4x128xf32>, vector<64x128xf32> -> vector<64x128xf32>
    %108 = arith.addf %102, %107 : vector<64x128xf32>
    %109 = vector.extract_strided_slice %60 {offsets = [2, 2, 0], sizes = [8, 8, 4], strides = [1, 1, 1]} : vector<10x10x4xf32> to vector<8x8x4xf32>
    %110 = vector.shape_cast %109 : vector<8x8x4xf32> to vector<64x4xf32>
    %c17 = arith.constant 17 : index
    %c0_62 = arith.constant 0 : index
    %c0_63 = arith.constant 0 : index
    %111 = vector.load %arg5[%c17, %c0_62, %c0_63] : memref<27x4x128xf32, #tpu.memory_space<vmem>>, vector<1x4x128xf32>
    %112 = vector.shape_cast %111 : vector<1x4x128xf32> to vector<4x128xf32>
    %cst_64 = arith.constant dense<0.000000e+00> : vector<64x128xf32>
    %113 = tpu.matmul %110, %112, %cst_64 {dimension_numbers = #tpu.dot_dimension_numbers<[1], [0], [0], [1], [0, 0, 1, 1], [], []>} : vector<64x4xf32>, vector<4x128xf32>, vector<64x128xf32> -> vector<64x128xf32>
    %114 = arith.addf %108, %113 : vector<64x128xf32>
    %c0_65 = arith.constant 0 : index
    %c0_66 = arith.constant 0 : index
    %c0_67 = arith.constant 0 : index
    %c0_68 = arith.constant 0 : index
    %c0_69 = arith.constant 0 : index
    %115 = vector.load %arg4[%c0_65, %c0_66, %c0_67, %c0_68, %c0_69] : memref<1x1x10x10x4xf32, #tpu.memory_space<vmem>>, vector<1x1x10x10x4xf32>
    %116 = vector.shape_cast %115 : vector<1x1x10x10x4xf32> to vector<10x10x4xf32>
    %117 = vector.extract_strided_slice %116 {offsets = [0, 0, 0], sizes = [8, 8, 4], strides = [1, 1, 1]} : vector<10x10x4xf32> to vector<8x8x4xf32>
    %118 = vector.shape_cast %117 : vector<8x8x4xf32> to vector<64x4xf32>
    %c18 = arith.constant 18 : index
    %c0_70 = arith.constant 0 : index
    %c0_71 = arith.constant 0 : index
    %119 = vector.load %arg5[%c18, %c0_70, %c0_71] : memref<27x4x128xf32, #tpu.memory_space<vmem>>, vector<1x4x128xf32>
    %120 = vector.shape_cast %119 : vector<1x4x128xf32> to vector<4x128xf32>
    %cst_72 = arith.constant dense<0.000000e+00> : vector<64x128xf32>
    %121 = tpu.matmul %118, %120, %cst_72 {dimension_numbers = #tpu.dot_dimension_numbers<[1], [0], [0], [1], [0, 0, 1, 1], [], []>} : vector<64x4xf32>, vector<4x128xf32>, vector<64x128xf32> -> vector<64x128xf32>
    %122 = arith.addf %114, %121 : vector<64x128xf32>
    %123 = vector.extract_strided_slice %116 {offsets = [0, 1, 0], sizes = [8, 8, 4], strides = [1, 1, 1]} : vector<10x10x4xf32> to vector<8x8x4xf32>
    %124 = vector.shape_cast %123 : vector<8x8x4xf32> to vector<64x4xf32>
    %c19 = arith.constant 19 : index
    %c0_73 = arith.constant 0 : index
    %c0_74 = arith.constant 0 : index
    %125 = vector.load %arg5[%c19, %c0_73, %c0_74] : memref<27x4x128xf32, #tpu.memory_space<vmem>>, vector<1x4x128xf32>
    %126 = vector.shape_cast %125 : vector<1x4x128xf32> to vector<4x128xf32>
    %cst_75 = arith.constant dense<0.000000e+00> : vector<64x128xf32>
    %127 = tpu.matmul %124, %126, %cst_75 {dimension_numbers = #tpu.dot_dimension_numbers<[1], [0], [0], [1], [0, 0, 1, 1], [], []>} : vector<64x4xf32>, vector<4x128xf32>, vector<64x128xf32> -> vector<64x128xf32>
    %128 = arith.addf %122, %127 : vector<64x128xf32>
    %129 = vector.extract_strided_slice %116 {offsets = [0, 2, 0], sizes = [8, 8, 4], strides = [1, 1, 1]} : vector<10x10x4xf32> to vector<8x8x4xf32>
    %130 = vector.shape_cast %129 : vector<8x8x4xf32> to vector<64x4xf32>
    %c20 = arith.constant 20 : index
    %c0_76 = arith.constant 0 : index
    %c0_77 = arith.constant 0 : index
    %131 = vector.load %arg5[%c20, %c0_76, %c0_77] : memref<27x4x128xf32, #tpu.memory_space<vmem>>, vector<1x4x128xf32>
    %132 = vector.shape_cast %131 : vector<1x4x128xf32> to vector<4x128xf32>
    %cst_78 = arith.constant dense<0.000000e+00> : vector<64x128xf32>
    %133 = tpu.matmul %130, %132, %cst_78 {dimension_numbers = #tpu.dot_dimension_numbers<[1], [0], [0], [1], [0, 0, 1, 1], [], []>} : vector<64x4xf32>, vector<4x128xf32>, vector<64x128xf32> -> vector<64x128xf32>
    %134 = arith.addf %128, %133 : vector<64x128xf32>
    %135 = vector.extract_strided_slice %116 {offsets = [1, 0, 0], sizes = [8, 8, 4], strides = [1, 1, 1]} : vector<10x10x4xf32> to vector<8x8x4xf32>
    %136 = vector.shape_cast %135 : vector<8x8x4xf32> to vector<64x4xf32>
    %c21 = arith.constant 21 : index
    %c0_79 = arith.constant 0 : index
    %c0_80 = arith.constant 0 : index
    %137 = vector.load %arg5[%c21, %c0_79, %c0_80] : memref<27x4x128xf32, #tpu.memory_space<vmem>>, vector<1x4x128xf32>
    %138 = vector.shape_cast %137 : vector<1x4x128xf32> to vector<4x128xf32>
    %cst_81 = arith.constant dense<0.000000e+00> : vector<64x128xf32>
    %139 = tpu.matmul %136, %138, %cst_81 {dimension_numbers = #tpu.dot_dimension_numbers<[1], [0], [0], [1], [0, 0, 1, 1], [], []>} : vector<64x4xf32>, vector<4x128xf32>, vector<64x128xf32> -> vector<64x128xf32>
    %140 = arith.addf %134, %139 : vector<64x128xf32>
    %141 = vector.extract_strided_slice %116 {offsets = [1, 1, 0], sizes = [8, 8, 4], strides = [1, 1, 1]} : vector<10x10x4xf32> to vector<8x8x4xf32>
    %142 = vector.shape_cast %141 : vector<8x8x4xf32> to vector<64x4xf32>
    %c22 = arith.constant 22 : index
    %c0_82 = arith.constant 0 : index
    %c0_83 = arith.constant 0 : index
    %143 = vector.load %arg5[%c22, %c0_82, %c0_83] : memref<27x4x128xf32, #tpu.memory_space<vmem>>, vector<1x4x128xf32>
    %144 = vector.shape_cast %143 : vector<1x4x128xf32> to vector<4x128xf32>
    %cst_84 = arith.constant dense<0.000000e+00> : vector<64x128xf32>
    %145 = tpu.matmul %142, %144, %cst_84 {dimension_numbers = #tpu.dot_dimension_numbers<[1], [0], [0], [1], [0, 0, 1, 1], [], []>} : vector<64x4xf32>, vector<4x128xf32>, vector<64x128xf32> -> vector<64x128xf32>
    %146 = arith.addf %140, %145 : vector<64x128xf32>
    %147 = vector.extract_strided_slice %116 {offsets = [1, 2, 0], sizes = [8, 8, 4], strides = [1, 1, 1]} : vector<10x10x4xf32> to vector<8x8x4xf32>
    %148 = vector.shape_cast %147 : vector<8x8x4xf32> to vector<64x4xf32>
    %c23 = arith.constant 23 : index
    %c0_85 = arith.constant 0 : index
    %c0_86 = arith.constant 0 : index
    %149 = vector.load %arg5[%c23, %c0_85, %c0_86] : memref<27x4x128xf32, #tpu.memory_space<vmem>>, vector<1x4x128xf32>
    %150 = vector.shape_cast %149 : vector<1x4x128xf32> to vector<4x128xf32>
    %cst_87 = arith.constant dense<0.000000e+00> : vector<64x128xf32>
    %151 = tpu.matmul %148, %150, %cst_87 {dimension_numbers = #tpu.dot_dimension_numbers<[1], [0], [0], [1], [0, 0, 1, 1], [], []>} : vector<64x4xf32>, vector<4x128xf32>, vector<64x128xf32> -> vector<64x128xf32>
    %152 = arith.addf %146, %151 : vector<64x128xf32>
    %153 = vector.extract_strided_slice %116 {offsets = [2, 0, 0], sizes = [8, 8, 4], strides = [1, 1, 1]} : vector<10x10x4xf32> to vector<8x8x4xf32>
    %154 = vector.shape_cast %153 : vector<8x8x4xf32> to vector<64x4xf32>
    %c24 = arith.constant 24 : index
    %c0_88 = arith.constant 0 : index
    %c0_89 = arith.constant 0 : index
    %155 = vector.load %arg5[%c24, %c0_88, %c0_89] : memref<27x4x128xf32, #tpu.memory_space<vmem>>, vector<1x4x128xf32>
    %156 = vector.shape_cast %155 : vector<1x4x128xf32> to vector<4x128xf32>
    %cst_90 = arith.constant dense<0.000000e+00> : vector<64x128xf32>
    %157 = tpu.matmul %154, %156, %cst_90 {dimension_numbers = #tpu.dot_dimension_numbers<[1], [0], [0], [1], [0, 0, 1, 1], [], []>} : vector<64x4xf32>, vector<4x128xf32>, vector<64x128xf32> -> vector<64x128xf32>
    %158 = arith.addf %152, %157 : vector<64x128xf32>
    %159 = vector.extract_strided_slice %116 {offsets = [2, 1, 0], sizes = [8, 8, 4], strides = [1, 1, 1]} : vector<10x10x4xf32> to vector<8x8x4xf32>
    %160 = vector.shape_cast %159 : vector<8x8x4xf32> to vector<64x4xf32>
    %c25 = arith.constant 25 : index
    %c0_91 = arith.constant 0 : index
    %c0_92 = arith.constant 0 : index
    %161 = vector.load %arg5[%c25, %c0_91, %c0_92] : memref<27x4x128xf32, #tpu.memory_space<vmem>>, vector<1x4x128xf32>
    %162 = vector.shape_cast %161 : vector<1x4x128xf32> to vector<4x128xf32>
    %cst_93 = arith.constant dense<0.000000e+00> : vector<64x128xf32>
    %163 = tpu.matmul %160, %162, %cst_93 {dimension_numbers = #tpu.dot_dimension_numbers<[1], [0], [0], [1], [0, 0, 1, 1], [], []>} : vector<64x4xf32>, vector<4x128xf32>, vector<64x128xf32> -> vector<64x128xf32>
    %164 = arith.addf %158, %163 : vector<64x128xf32>
    %165 = vector.extract_strided_slice %116 {offsets = [2, 2, 0], sizes = [8, 8, 4], strides = [1, 1, 1]} : vector<10x10x4xf32> to vector<8x8x4xf32>
    %166 = vector.shape_cast %165 : vector<8x8x4xf32> to vector<64x4xf32>
    %c26 = arith.constant 26 : index
    %c0_94 = arith.constant 0 : index
    %c0_95 = arith.constant 0 : index
    %167 = vector.load %arg5[%c26, %c0_94, %c0_95] : memref<27x4x128xf32, #tpu.memory_space<vmem>>, vector<1x4x128xf32>
    %168 = vector.shape_cast %167 : vector<1x4x128xf32> to vector<4x128xf32>
    %cst_96 = arith.constant dense<0.000000e+00> : vector<64x128xf32>
    %169 = tpu.matmul %166, %168, %cst_96 {dimension_numbers = #tpu.dot_dimension_numbers<[1], [0], [0], [1], [0, 0, 1, 1], [], []>} : vector<64x4xf32>, vector<4x128xf32>, vector<64x128xf32> -> vector<64x128xf32>
    %170 = arith.addf %164, %169 : vector<64x128xf32>
    %cst_97 = arith.constant 0.000000e+00 : f32
    %171 = vector.broadcast %cst_97 : f32 to vector<64x128xf32>
    %172 = arith.cmpf ogt, %170, %171 : vector<64x128xf32>
    %cst_98 = arith.constant 2.000000e-01 : f32
    %173 = vector.broadcast %cst_98 : f32 to vector<64x128xf32>
    %174 = arith.mulf %173, %170 : vector<64x128xf32>
    %175 = arith.select %172, %170, %174 : vector<64x128xi1>, vector<64x128xf32>
    %176 = arith.mulf %175, %175 : vector<64x128xf32>
    %cst_99 = arith.constant dense<0.000000e+00> : vector<64xf32>
    %177 = vector.multi_reduction <add>, %176, %cst_99 [1] : vector<64x128xf32> to vector<64xf32>
    %178 = vector.shape_cast %177 : vector<64xf32> to vector<64x1xf32>
    %cst_100 = arith.constant 1.250000e-01 : f32
    %179 = vector.broadcast %cst_100 : f32 to vector<64x1xf32>
    %180 = arith.mulf %178, %179 : vector<64x1xf32>
    %cst_101 = arith.constant 9.99999993E-9 : f32
    %181 = vector.broadcast %cst_101 : f32 to vector<64x1xf32>
    %182 = arith.addf %180, %181 : vector<64x1xf32>
    %183 = math.rsqrt %182 : vector<64x1xf32>
    %184 = vector.broadcast %183 : vector<64x1xf32> to vector<64x128xf32>
    %185 = arith.mulf %175, %184 : vector<64x128xf32>
    %c0_102 = arith.constant 0 : index
    %c0_103 = arith.constant 0 : index
    %c0_104 = arith.constant 0 : index
    %c0_105 = arith.constant 0 : index
    %186 = vector.load %arg7[%c0_102, %c0_103, %c0_104, %c0_105] : memref<1x1x64x128xf32, #tpu.memory_space<vmem>>, vector<1x1x64x128xf32>
    %187 = vector.shape_cast %186 : vector<1x1x64x128xf32> to vector<64x128xf32>
    %188 = vector.shape_cast %185 : vector<64x128xf32> to vector<1x1x64x128xf32>
    tpu.vector_store %arg7[%c0_102, %c0_103, %c0_104, %c0_105], %188 {strides = array<i32>} : memref<1x1x64x128xf32, #tpu.memory_space<vmem>>, vector<1x1x64x128xf32>,
    return
  }
  func.func @transform_0(%arg0: i32, %arg1: i32) -> (i32, i32, i32, i32, i32) {
    %c0_i32 = arith.constant 0 : i32
    %0 = arith.addi %arg1, %c0_i32 : i32
    %c0_i32_0 = arith.constant 0 : i32
    %c0_i32_1 = arith.constant 0 : i32
    %c0_i32_2 = arith.constant 0 : i32
    %c0_i32_3 = arith.constant 0 : i32
    return %arg0, %0, %c0_i32_0, %c0_i32_1, %c0_i32_2 : i32, i32, i32, i32, i32
  }
  func.func @transform_1(%arg0: i32, %arg1: i32) -> (i32, i32, i32, i32, i32) {
    %c1_i32 = arith.constant 1 : i32
    %0 = arith.addi %arg1, %c1_i32 : i32
    %c0_i32 = arith.constant 0 : i32
    %c0_i32_0 = arith.constant 0 : i32
    %c0_i32_1 = arith.constant 0 : i32
    %c0_i32_2 = arith.constant 0 : i32
    return %arg0, %0, %c0_i32, %c0_i32_0, %c0_i32_1 : i32, i32, i32, i32, i32
  }
  func.func @transform_2(%arg0: i32, %arg1: i32) -> (i32, i32, i32, i32, i32) {
    %c2_i32 = arith.constant 2 : i32
    %0 = arith.addi %arg1, %c2_i32 : i32
    %c0_i32 = arith.constant 0 : i32
    %c0_i32_0 = arith.constant 0 : i32
    %c0_i32_1 = arith.constant 0 : i32
    %c0_i32_2 = arith.constant 0 : i32
    return %arg0, %0, %c0_i32, %c0_i32_0, %c0_i32_1 : i32, i32, i32, i32, i32
  }
  func.func @transform_3(%arg0: i32, %arg1: i32) -> (i32, i32, i32) {
    %c0_i32 = arith.constant 0 : i32
    %c0_i32_0 = arith.constant 0 : i32
    %c0_i32_1 = arith.constant 0 : i32
    %c0_i32_2 = arith.constant 0 : i32
    return %c0_i32, %c0_i32_0, %c0_i32_1 : i32, i32, i32
  }
  func.func @transform_4(%arg0: i32, %arg1: i32) -> (i32, i32) {
    %c0_i32 = arith.constant 0 : i32
    %c0_i32_0 = arith.constant 0 : i32
    %c0_i32_1 = arith.constant 0 : i32
    return %c0_i32, %c0_i32_0 : i32, i32
  }
  func.func @transform_5(%arg0: i32, %arg1: i32) -> (i32, i32, i32, i32) {
    %c0_i32 = arith.constant 0 : i32
    %c0_i32_0 = arith.constant 0 : i32
    %c0_i32_1 = arith.constant 0 : i32
    return %arg0, %arg1, %c0_i32, %c0_i32_0 : i32, i32, i32, i32
  }
}

</mosaic_0001>

<bundles_post_ra>
// kernel: tpu_custom_call.1
= control target key start
LH: loop header
LB: loop body
LE: loop exit
PB: predicated region body
PF: predicated region fallthrough
CT: control target
= control target key end

     0   :  { %10 = vsyncpa [#allocation3], 0  ;;  %s4354_s0 = inlined_call_operand.vmem [shape: f32[2,10,10,10,4], index: 0, kind: input, shape index: {}]   ;;  %s4355_s1 = inlined_call_operand.vmem [shape: f32[2,10,10,10,4], index: 1, kind: input, shape index: {}]   ;;  %s4356_s2 = inlined_call_operand.vmem [shape: f32[2,10,10,10,4], index: 2, kind: input, shape index: {}]   ;;  %s4357_s3 = inlined_call_operand.vmem [shape: f32[27,4,128], index: 3, kind: input, shape index: {}]   ;;  %s4358_s4 = inlined_call_operand.vmem [shape: f32[1,128], index: 4, kind: input, shape index: {}]   ;;  %s4359_s5 = inlined_call_operand.hbm [shape: f32[2,8,64,128], index: 5, kind: output, shape index: {}]  }
   0x1   :  { %12 = vsyncpa [#allocation3 + $0x1], 0  ;;  %s3092_s18 = smov 0   ;;  %s3094_s19 = smov 0  }
   0x2   :  { %s3096_s20 = smov 0   ;;  %s3098_s21 = smov 0  }
   0x3   :  { %s3100_s22 = smov 0   ;;  %s3102_s23 = smov 0  }
   0x4   :  { %s3104_s24 = smov 0   ;;  %s3106_s25 = smov 0  }
   0x5 LB: > { %s2583_s26 = sadd.s32 4294967295, %s3058_s25   ;;  %s2584_s27 = sadd.s32 4294967294, %s3058_s25   ;;  %s3058_s25 = sphi %s3106_s25, %s18_s25   ;;  %s3054_s24 = sphi %s3104_s24, %s4368_s24   ;;  %s3050_s23 = sphi %s3102_s23, %s4367_s23   ;;  %s3046_s22 = sphi %s3100_s22, %s4366_s22   ;;  %s3042_s21 = sphi %s3098_s21, %s4365_s21   ;;  %s3038_s20 = sphi %s3096_s20, %s4364_s20   ;;  %s3034_s19 = sphi %s3094_s19, %s4363_s19   ;;  %s3030_s18 = sphi %s3092_s18, %s4362_s18  }
   0x6   : > { %s27_s28 = sadd.s32 1, %s3050_s23  ;;  %s30_s29 = sadd.s32 1, %s3054_s24 }
   0x7   : > { %p28_p0 = scmp.ge.s32.totalorder %s27_s28, 8  ;;  %p179_p1 = scmp.ne.s32.totalorder %s3038_s20, %s3034_s19 }
   0x8   : > { %p180_p2 = scmp.eq.s32.totalorder %s2583_s26, 15  ;;  %p185_p5 = scmp.ne.s32.totalorder %s3034_s19, %s3030_s18 }
   0x9   : > { %s4370_s28 = smov (%p28_p0, %s27_s28), 0  ;;  %s4372_s29 = smov (!%p28_p0, %s30_s29), %s3054_s24 }
   0xa   : > { %s165_s30 = ssub.s32 %s3050_s23, %s4370_s28  ;;  %p3143_p3 = por %p180_p2, %p179_p1 }
   0xb   : > { %p32_p4 = scmp.ge.s32.totalorder %s4372_s29, 2  ;;  %p186_p6 = scmp.eq.s32.totalorder %s2584_s27, 15 }
   0xc   : > { %p2587_p7 = scmp.ge.s32.totalorder %s3058_s25, 1  ;;  %p250_p9 = scmp.lt.s32.totalorder %s3058_s25, 17 }
   0xd   : > { %s4374_s29 = smov (%p32_p4, %s4372_s29), 0  ;;  %p3152_p8 = por %p186_p6, %p185_p5 }
   0xe   : > { %s164_s8 = ssub.s32 %s3054_s24, %s4374_s29  ;;  %s169_s9 = sadd.s32 1, %s3038_s20 }
   0xf   : > { %s166_s10 = sor.u32 %s165_s30, %s164_s8  ;;  %p251_p10 = pnand %p2587_p7, %p250_p9 }
  0x10   : > { %p167_p11 = scmp.eq.s32.totalorder %s166_s10, 0  ;;  %p302_p12 = scmp.lt.s32.totalorder (!%p251_p10), %s3046_s22, 1 }
  0x11   : > { %254 = sbr.rel (%p251_p10) target bundleno = 745 (0x2e9), region = 40  ;;  %p304_p13 = scmp.lt.s32.totalorder (!%p251_p10), %s3042_s21, 9 }
  0x12   : > { %s3161_s11 = scalar_select %p167_p11, %s3038_s20, %s169_s9  }
  0x16   : > { %v357_v0 = vld [vmem:[%s4357_s3] sm:$0xf]  ;;  %vm383_vm0 = vcmask 1043456   ;;  %v2601_v1 = vld [vmem:[%s4357_s3 + $0x4] sm:$0xf]  ;;  %s303_s26 = scalar_select %p302_p12, %s3046_s22, 1 }
  0x17   : > { %2867 = vmatpush.msk.msra.mxu3 %vm383_vm0, %v357_v0  ;;  %v2611_v2 = vld [vmem:[%s4357_s3 + $0x8] sm:$0xf]  ;;  %2592 = vmatpush.msk.msra.mxu0 %vm383_vm0, %v357_v0  ;;  %v2651_v3 = vld [vmem:[%s4357_s3 + $0x18] sm:$0xf]  ;;  %v2631_v4 = vld [vmem:[%s4357_s3 + $0x10] sm:$0xf] }
  0x18   : > { %2612 = vmatpush.msk.msra.mxu2 %vm383_vm0, %v2611_v2  ;;  %s305_s10 = scalar_select %p304_p13, %s3042_s21, 9  ;;  %v2641_v5 = vld [vmem:[%s4357_s3 + $0x14] sm:$0xf]  ;;  %2602 = vmatpush.msk.msra.mxu1 %vm383_vm0, %v2601_v1  ;;  %vm358_vm1 = vcmask 31744   ;;  %vm539_vm2 = vcmask 1045504   ;;  %vm444_vm3 = vcmask 1046528  }
  0x19   : > { %2868 = vmatpush.msk.msrb.mxu3 %vm383_vm0, %v2601_v1  ;;  %2632 = vmatpush.msk.msrb.mxu0 %vm383_vm0, %v2631_v4  ;;  %s3191_s14 = smul.u32 200, %s303_s26  ;;  %v2621_v35 = vld [vmem:[%s4357_s3 + $0xc] sm:$0xf]  ;;  %v2691_v42 = vld [vmem:[%s4357_s3 + $0x28] sm:$0xf] }
  0x1a   : > { %2652 = vmatpush.msk.msrb.mxu2 %vm383_vm0, %v2651_v3  ;;  %s2870_s15 = smul.u32 20, %s305_s10  ;;  %2642 = vmatpush.msk.msrb.mxu1 %vm383_vm0, %v2641_v5  ;;  %v2671_v50 = vld [vmem:[%s4357_s3 + $0x20] sm:$0xf]  ;;  %v2681_v51 = vld [vmem:[%s4357_s3 + $0x24] sm:$0xf]  ;;  %s311_s10 = sadd.s32 1, %s3042_s21 }
  0x1b   : > { %v2661_v61 = vld [vmem:[%s4357_s3 + $0x1c] sm:$0xf]  ;;  %p314_p0 = scmp.lt.s32.totalorder %s311_s10, 9 }
  0x1c   : > { %s308_s16 = sadd.s32 %s3191_s14, %s2870_s15 }
  0x1d   : > { %s2589_s17 = sshll.u32 %s308_s16, 3  ;;  %s4376_s10 = smov (!%p314_p0, %s311_s10), 9 }
  0x1e   : > { %s3199_s8 = scalar_lea.vmem %s4354_s0, %s2589_s17  ;;  %s2872_s30 = smul.u32 20, %s4376_s10 }
  0x1f   : > { %v3202_v6 = vld [vmem:[%s3199_s8 + $0x60] sm:$0xff]  ;;  %v338_v8 = vld [vmem:[%s3199_s8 + $0x8] sm:$0x3]  ;;  %v3210_v13 = vld [vmem:[%s3199_s8 + $0x10] sm:$0xff] }
  0x20   : > { %v337_v7 = vld [vmem:[%s3199_s8] sm:$0xff]  ;;  %2599 = vmatmul.msk.f32.vlgmr.msra.gmra.mxu3 %vm358_vm1, %v3202_v6  ;;  %v541_v10 = vrot.slane %v338_v8, 2  ;;  %v446_v12 = vrot.slane %v338_v8, 1  ;;  %v340_v14 = vld [vmem:[%s3199_s8 + $0x18] sm:$0x3]  ;;  %v543_v17 = vrot.slane %v3210_v13, 2  ;;  %s318_s26 = sadd.s32 %s2872_s30, %s3191_s14 }
  0x21   : > { %v540_v9 = vrot.slane %v337_v7, 2  ;;  %2593 = vmatmul.msk.f32.vlgmr.msra.gmra.mxu0 %vm358_vm1, %v337_v7  ;;  %v445_v11 = vrot.slane %v337_v7, 1  ;;  %2869 = vmatpush.msk.msra.mxu3 %vm383_vm0, %v2611_v2  ;;  %v544_v18 = vrot.slane %v340_v14, 2  ;;  %v448_v19 = vrot.slane %v3210_v13, 1  ;;  %v3221_v21 = vld [vmem:[%s3199_s8 + $0x70] sm:$0xff]  ;;  %v3236_v27 = vld [vmem:[%s3199_s8 + $0x20] sm:$0xff] }
  0x22   : > { %v449_v20 = vrot.slane %v340_v14, 1  ;;  %v350_v22 = vld [vmem:[%s3199_s8 + $0x68] sm:$0x3]  ;;  %v463_v25 = vrot.slane %v3202_v6, 1  ;;  %v546_v29 = vrot.slane %v3236_v27, 2  ;;  %v451_v31 = vrot.slane %v3236_v27, 1  ;;  %2672 = vmatpush.msk.msra.mxu0 %vm383_vm0, %v2671_v50 }
  0x23   : > { %v542_v15 = vsel %vm539_vm2, %v540_v9, %v541_v10  ;;  %v447_v16 = vsel %vm444_vm3, %v445_v11, %v446_v12  ;;  %v3227_v23 = vsel %vm539_vm2, %v543_v17, %v544_v18  ;;  %v464_v26 = vrot.slane %v350_v22, 1  ;;  %v342_v28 = vld [vmem:[%s3199_s8 + $0x28] sm:$0x3]  ;;  %v352_v34 = vld [vmem:[%s3199_s8 + $0x78] sm:$0x3]  ;;  %v343_v40 = vld [vmem:[%s3199_s8 + $0x30] sm:$0xff] }
  0x24   : > { %2613 = vmatmul.msk.f32.vlgmr.msra.gmra.mxu2 %vm358_vm1, %v542_v15  ;;  %2603 = vmatmul.msk.f32.vlgmr.msra.gmra.mxu1 %vm358_vm1, %v447_v16  ;;  %v3232_v24 = vsel %vm444_vm3, %v448_v19, %v449_v20  ;;  %v547_v30 = vrot.slane %v342_v28, 2  ;;  %v452_v32 = vrot.slane %v342_v28, 1  ;;  %v466_v38 = vrot.slane %v3221_v21, 1  ;;  %v344_v41 = vld [vmem:[%s3199_s8 + $0x38] sm:$0x3]  ;;  %v345_v54 = vld [vmem:[%s3199_s8 + $0x40] sm:$0xff] }
  0x25   : > { %v3246_v33 = vsel %vm444_vm3, %v463_v25, %v464_v26  ;;  %v467_v39 = vrot.slane %v352_v34, 1  ;;  %v549_v43 = vrot.slane %v343_v40, 2  ;;  %v550_v44 = vrot.slane %v344_v41, 2  ;;  %2692 = vmatpush.msk.msra.mxu2 %vm383_vm0, %v2691_v42  ;;  %v346_v55 = vld [vmem:[%s3199_s8 + $0x48] sm:$0x3]  ;;  %2682 = vmatpush.msk.msra.mxu1 %vm383_vm0, %v2681_v51  ;;  %v347_v2 = vld [vmem:[%s3199_s8 + $0x50] sm:$0xff] }
  0x26   : > { %v3255_v36 = vsel %vm539_vm2, %v546_v29, %v547_v30  ;;  %v3260_v37 = vsel %vm444_vm3, %v451_v31, %v452_v32  ;;  %v454_v45 = vrot.slane %v343_v40, 1  ;;  %v455_v46 = vrot.slane %v344_v41, 1  ;;  %v348_v3 = vld [vmem:[%s3199_s8 + $0x58] sm:$0x3]  ;;  %v2701_v12 = vld [vmem:[%s4357_s3 + $0x2c] sm:$0xf] }
  0x27   : > { %v3275_v47 = vsel %vm444_vm3, %v466_v38, %v467_v39  ;;  %v3280_v48 = vsel %vm539_vm2, %v549_v43, %v550_v44  ;;  %v559_v52 = vrot.slane %v350_v22, 2  ;;  %v558_v53 = vrot.slane %v3202_v6, 2  ;;  %v2711_v14 = vld [vmem:[%s4357_s3 + $0x30] sm:$0xf]  ;;  %v2721_v15 = vld [vmem:[%s4357_s3 + $0x34] sm:$0xf] }
  0x28   : > { %2600 = vmatmul.msk.f32.gmra.mxu3 %vm358_vm1, %v3221_v21  ;;  %v3284_v49 = vsel %vm444_vm3, %v454_v45, %v455_v46  ;;  %v552_v56 = vrot.slane %v345_v54, 2  ;;  %v553_v57 = vrot.slane %v346_v55, 2  ;;  %v457_v58 = vrot.slane %v345_v54, 1  ;;  %v353_v16 = vld [vmem:[%s3199_s8 + $0x80] sm:$0xff]  ;;  %s2590_s9 = sshll.u32 %s318_s26, 3  ;;  %s322_s30 = sadd.s32 2, %s3042_s21 }
  0x29   : > { %2594 = vmatmul.msk.f32.gmra.mxu0 %vm358_vm1, %v3210_v13  ;;  %v458_v59 = vrot.slane %v346_v55, 1  ;;  %v3302_v60 = vsel %vm539_vm2, %v558_v53, %v559_v52  ;;  %v561_v0 = vrot.slane %v3221_v21, 2  ;;  %v562_v1 = vrot.slane %v352_v34, 2  ;;  %s3415_s13 = scalar_lea.vmem %s4355_s1, %s2590_s9  ;;  %p325_p1 = scmp.lt.s32.totalorder %s322_s30, 9 }
  0x2a   : > { %v3310_v62 = vsel %vm539_vm2, %v552_v56, %v553_v57  ;;  %v555_v4 = vrot.slane %v347_v2, 2  ;;  %v556_v5 = vrot.slane %v348_v3, 2  ;;  %v460_v7 = vrot.slane %v347_v2, 1  ;;  %v3430_v25 = vld [vmem:[%s3415_s13 + $0x8] sm:$0x3]  ;;  %v3444_v29 = vld [vmem:[%s3415_s13 + $0x10] sm:$0xff] }
  0x2b   : > { %v3314_v63 = vsel %vm444_vm3, %v457_v58, %v458_v59  ;;  %v461_v8 = vrot.slane %v348_v3, 1  ;;  %v3325_v9 = vsel %vm539_vm2, %v561_v0, %v562_v1  ;;  %v692_v17 = vrot.slane %v353_v16, 1  ;;  %v3447_v30 = vld [vmem:[%s3415_s13 + $0x18] sm:$0x3]  ;;  %v3485_v42 = vld [vmem:[%s3415_s13 + $0x30] sm:$0xff]  ;;  %v3510_v52 = vld [vmem:[%s3415_s13 + $0x40] sm:$0xff] }
  0x2c   : > { %2614 = vmatmul.msk.f32.gmra.mxu2 %vm358_vm1, %v3227_v23  ;;  %2604 = vmatmul.msk.f32.gmra.mxu1 %vm358_vm1, %v3232_v24  ;;  %v3330_v10 = vsel %vm539_vm2, %v555_v4, %v556_v5  ;;  %v751_v19 = vrot.slane %v353_v16, 2  ;;  %v1095_v31 = vrot.slane %v3444_v29, 1  ;;  %v1096_v32 = vrot.slane %v3447_v30, 1  ;;  %v3488_v43 = vld [vmem:[%s3415_s13 + $0x38] sm:$0x3]  ;;  %v3543_v0 = vld [vmem:[%s3415_s13 + $0x50] sm:$0xff] }
  0x2d   : > { %v3334_v11 = vsel %vm444_vm3, %v460_v7, %v461_v8  ;;  %v1101_v45 = vrot.slane %v3485_v42, 1  ;;  %v1102_v46 = vrot.slane %v3488_v43, 1  ;;  %v3513_v53 = vld [vmem:[%s3415_s13 + $0x48] sm:$0x3]  ;;  %v1104_v55 = vrot.slane %v3510_v52, 1  ;;  %s4378_s30 = smov (!%p325_p1, %s322_s30), 9 }
  0x2e   : > { %v3457_v34 = vsel %vm444_vm3, %v1095_v31, %v1096_v32  ;;  %v1105_v56 = vrot.slane %v3513_v53, 1  ;;  %v3526_v58 = vld [vmem:[%s4358_s4] ss:$0 sm:$0xff]  ;;  %v3546_v1 = vld [vmem:[%s3415_s13 + $0x58] sm:$0x3]  ;;  %v1107_v3 = vrot.slane %v3543_v0, 1 }
  0x2f   : > { %v3503_v50 = vsel %vm444_vm3, %v1101_v45, %v1102_v46  ;;  %v1108_v4 = vrot.slane %v3546_v1, 1  ;;  %v2771_v8 = vld [vmem:[%s4357_s3 + $0x48] sm:$0xf]  ;;  %s2873_s15 = smul.u32 20, %s4378_s30  ;;  %s2863_s30 = sshll.u32 %s3046_s22, 6 }
  0x30   : > { %2609 = vmatmul.msk.f32.vlgmr.msrb.gmra.mxu3 %vm358_vm1, %v3246_v33 }
  0x31   : > { %2595 = vmatmul.msk.f32.gmra.mxu0 %vm358_vm1, %v3236_v27  ;;  %2622 = vmatpush.msk.msrb.mxu3 %vm383_vm0, %v2621_v35  ;;  %v3462_v35 = vld [vmem:[%s3415_s13 + $0x20] sm:$0xff] }
  0x34   : > { %2615 = vmatmul.msk.f32.gmra.mxu2 %vm358_vm1, %v3255_v36  ;;  %2605 = vmatmul.msk.f32.gmra.mxu1 %vm358_vm1, %v3260_v37 }
  0x38   : > { %2610 = vmatmul.msk.f32.gmra.mxu3 %vm358_vm1, %v3275_v47 }
  0x39   : > { %2596 = vmatmul.msk.f32.gmra.mxu0 %vm358_vm1, %v343_v40 }
  0x3c   : > { %2616 = vmatmul.msk.f32.gmra.mxu2 %vm358_vm1, %v3280_v48  ;;  %2606 = vmatmul.msk.f32.gmra.mxu1 %vm358_vm1, %v3284_v49 }
  0x40   : > { %2619 = vmatmul.msk.f32.vlgmr.msra.gmra.mxu3 %vm358_vm1, %v3302_v60 }
  0x41   : > { %2597 = vmatmul.msk.f32.gmra.mxu0 %vm358_vm1, %v345_v54  ;;  %2662 = vmatpush.msk.msra.mxu3 %vm383_vm0, %v2661_v61  ;;  %v3533_v61 = vsel %vm444_vm3, %v1104_v55, %v1105_v56 }
  0x44   : > { %2617 = vmatmul.msk.f32.gmra.mxu2 %vm358_vm1, %v3310_v62  ;;  %2607 = vmatmul.msk.f32.gmra.mxu1 %vm358_vm1, %v3314_v63 }
  0x48   : > { %2620 = vmatmul.msk.f32.gmra.mxu3 %vm358_vm1, %v3325_v9 }
  0x49   : > { %2598 = vmatmul.msk.f32.gmra.mxu0 %vm358_vm1, %v347_v2 }
  0x4c   : > { %2618 = vmatmul.msk.f32.gmra.mxu2 %vm358_vm1, %v3330_v10  ;;  %2608 = vmatmul.msk.f32.gmra.mxu1 %vm358_vm1, %v3334_v11 }
  0x50   : > { %2623 = vmatmul.msk.f32.vlgmr.msrb.gmra.mxu3 %vm358_vm1, %v3210_v13  ;;  %v2731_v13 = vld [vmem:[%s4357_s3 + $0x38] sm:$0xf] }
  0x51   : > { %2633 = vmatmul.msk.f32.vlgmr.msrb.gmra.mxu0 %vm358_vm1, %v3232_v24  ;;  %2702 = vmatpush.msk.msrb.mxu3 %vm383_vm0, %v2701_v12  ;;  %v3427_v24 = vld [vmem:[%s3415_s13] sm:$0xff] }
  0x52   : > { %2712 = vmatpush.msk.msrb.mxu0 %vm383_vm0, %v2711_v14  ;;  %v1092_v26 = vrot.slane %v3427_v24, 1  ;;  %v2751_v12 = vld [vmem:[%s4357_s3 + $0x40] sm:$0xf]  ;;  %v3580_v14 = vld [vmem:[%s3415_s13 + $0x68] sm:$0x3] }
  0x54   : > { %2653 = vmatmul.msk.f32.vlgmr.msrb.gmra.mxu2 %vm358_vm1, %v3236_v27  ;;  %2643 = vmatmul.msk.f32.vlgmr.msrb.gmra.mxu1 %vm358_vm1, %v3227_v23 }
  0x55   : > { %2732 = vmatpush.msk.msrb.mxu2 %vm383_vm0, %v2731_v13  ;;  %2722 = vmatpush.msk.msrb.mxu1 %vm383_vm0, %v2721_v15  ;;  %v3577_v13 = vld [vmem:[%s3415_s13 + $0x60] sm:$0xff] }
  0x56   : > { %v2761_v15 = vld [vmem:[%s4357_s3 + $0x44] sm:$0xf] }
  0x58   : > { %2624 = vmatmul.msk.f32.gmra.mxu3 %vm358_vm1, %v3236_v27  ;;  %v1093_v27 = vrot.slane %v3430_v25, 1 }
  0x59   : > { %2634 = vmatmul.msk.f32.gmra.mxu0 %vm358_vm1, %v3260_v37 }
  0x5a   : > { %v1094_v28 = vsel %vm444_vm3, %v1092_v26, %v1093_v27 }
  0x5c   : > { %2654 = vmatmul.msk.f32.gmra.mxu2 %vm358_vm1, %v343_v40  ;;  %2644 = vmatmul.msk.f32.gmra.mxu1 %vm358_vm1, %v3255_v36 }
  0x60   : > { %2625 = vmatmul.msk.f32.gmra.mxu3 %vm358_vm1, %v343_v40 }
  0x61   : > { %2635 = vmatmul.msk.f32.gmra.mxu0 %vm358_vm1, %v3284_v49 }
  0x64   : > { %2655 = vmatmul.msk.f32.gmra.mxu2 %vm358_vm1, %v345_v54  ;;  %2645 = vmatmul.msk.f32.gmra.mxu1 %vm358_vm1, %v3280_v48 }
  0x68   : > { %2626 = vmatmul.msk.f32.gmra.mxu3 %vm358_vm1, %v345_v54 }
  0x69   : > { %2636 = vmatmul.msk.f32.gmra.mxu0 %vm358_vm1, %v3314_v63 }
  0x6c   : > { %2656 = vmatmul.msk.f32.gmra.mxu2 %vm358_vm1, %v347_v2  ;;  %2646 = vmatmul.msk.f32.gmra.mxu1 %vm358_vm1, %v3310_v62 }
  0x70   : > { %2627 = vmatmul.msk.f32.gmra.mxu3 %vm358_vm1, %v347_v2 }
  0x71   : > { %2637 = vmatmul.msk.f32.gmra.mxu0 %vm358_vm1, %v3334_v11 }
  0x74   : > { %2657 = vmatmul.msk.f32.gmra.mxu2 %vm358_vm1, %v3202_v6  ;;  %2647 = vmatmul.msk.f32.gmra.mxu1 %vm358_vm1, %v3330_v10 }
  0x78   : > { %2628 = vmatmul.msk.f32.gmra.mxu3 %vm358_vm1, %v3202_v6  ;;  %v354_v6 = vld [vmem:[%s3199_s8 + $0x88] sm:$0x3] }
  0x79   : > { %2638 = vmatmul.msk.f32.gmra.mxu0 %vm358_vm1, %v3246_v33  ;;  %v693_v18 = vrot.slane %v354_v6, 1  ;;  %v752_v20 = vrot.slane %v354_v6, 2 }
  0x7b   : > { %v3410_v22 = vsel %vm444_vm3, %v692_v17, %v693_v18  ;;  %v3424_v23 = vsel %vm539_vm2, %v751_v19, %v752_v20  ;;  %v1111_v17 = vrot.slane %v3580_v14, 1  ;;  %v356_v20 = vld [vmem:[%s3199_s8 + $0x98] sm:$0x3] }
  0x7c   : > { %2658 = vmatmul.msk.f32.gmra.mxu2 %vm358_vm1, %v3221_v21  ;;  %2648 = vmatmul.msk.f32.gmra.mxu1 %vm358_vm1, %v3302_v60  ;;  %v869_v32 = vrot.slane %v356_v20, 1 }
  0x80   : > { %2629 = vmatmul.msk.f32.gmra.mxu3 %vm358_vm1, %v3221_v21  ;;  %v3419_v21 = vld [vmem:[%s3199_s8 + $0x90] sm:$0xff]  ;;  %s329_s8 = sadd.s32 %s2873_s15, %s3191_s14 }
  0x81   : > { %2639 = vmatmul.msk.f32.gmra.mxu0 %vm358_vm1, %v3275_v47  ;;  %v868_v26 = vrot.slane %v3419_v21, 1  ;;  %v927_v31 = vrot.slane %v3419_v21, 2  ;;  %s2591_s16 = sshll.u32 %s329_s8, 3 }
  0x82   : > { %s3815_s27 = scalar_lea.vmem %s4356_s2, %s2591_s16 }
  0x84   : > { %2659 = vmatmul.msk.f32.gmra.mxu2 %vm358_vm1, %v353_v16  ;;  %2649 = vmatmul.msk.f32.gmra.mxu1 %vm358_vm1, %v3325_v9 }
  0x88   : > { %2630 = vmatmul.msk.f32.gmra.mxu3 %vm358_vm1, %v353_v16  ;;  %v1110_v16 = vrot.slane %v3577_v13, 1 }
  0x89   : > { %2640 = vmatmul.msk.f32.gmra.mxu0 %vm358_vm1, %v3410_v22 }
  0x8a   : > { %v3603_v27 = vsel %vm444_vm3, %v1110_v16, %v1111_v17 }
  0x8c   : > { %2660 = vmatmul.msk.f32.gmra.mxu2 %vm358_vm1, %v3419_v21  ;;  %2650 = vmatmul.msk.f32.gmra.mxu1 %vm358_vm1, %v3424_v23  ;;  %v870_v21 = vsel %vm444_vm3, %v868_v26, %v869_v32 }
  0x90   : > { %2663 = vmatmul.msk.f32.vlgmr.msra.gmra.mxu3 %vm358_vm1, %v3260_v37  ;;  %v1098_v37 = vrot.slane %v3462_v35, 1 }
  0x91   : > { %2673 = vmatmul.msk.f32.vlgmr.msra.gmra.mxu0 %vm358_vm1, %v3255_v36  ;;  %v3465_v36 = vld [vmem:[%s3415_s13 + $0x28] sm:$0x3] }
  0x92   : > { %v1099_v38 = vrot.slane %v3465_v36, 1  ;;  %2752 = vmatpush.msk.msra.mxu0 %vm383_vm0, %v2751_v12  ;;  %v1193_v26 = vrot.slane %v3465_v36, 2 }
  0x94   : > { %2693 = vmatmul.msk.f32.vlgmr.msra.gmra.mxu2 %vm358_vm1, %v1094_v28  ;;  %2683 = vmatmul.msk.f32.vlgmr.msra.gmra.mxu1 %vm358_vm1, %v3427_v24  ;;  %v3478_v40 = vsel %vm444_vm3, %v1098_v37, %v1099_v38  ;;  %v3611_v37 = vld [vmem:[%s3415_s13 + $0x70] sm:$0xff]  ;;  %v3614_v38 = vld [vmem:[%s3415_s13 + $0x78] sm:$0x3] }
  0x95   : > { %2772 = vmatpush.msk.msra.mxu2 %vm383_vm0, %v2771_v8  ;;  %2762 = vmatpush.msk.msra.mxu1 %vm383_vm0, %v2761_v15  ;;  %v1113_v46 = vrot.slane %v3611_v37, 1  ;;  %v1190_v8 = vrot.slane %v3447_v30, 2 }
  0x98   : > { %2664 = vmatmul.msk.f32.gmra.mxu3 %vm358_vm1, %v3284_v49 }
  0x99   : > { %2674 = vmatmul.msk.f32.gmra.mxu0 %vm358_vm1, %v3280_v48 }
  0x9c   : > { %2694 = vmatmul.msk.f32.gmra.mxu2 %vm358_vm1, %v3457_v34  ;;  %2684 = vmatmul.msk.f32.gmra.mxu1 %vm358_vm1, %v3444_v29 }
  0x9e   : > { %v3473_v39 = vpop.f32.mrf.mxu0 }
  0xa0   : > { %2665 = vmatmul.msk.f32.gmra.mxu3 %vm358_vm1, %v3314_v63  ;;  %v2741_v63 = vld [vmem:[%s4357_s3 + $0x3c] sm:$0xf] }
  0xa1   : > { %v3480_v41 = vpop.f32.mrf.mxu1  ;;  %2675 = vmatmul.msk.f32.gmra.mxu0 %vm358_vm1, %v3310_v62  ;;  %2742 = vmatpush.msk.msra.mxu3 %vm383_vm0, %v2741_v63 }
  0xa3   : > { %v422_v44 = vpop.f32.mrf.mxu3 }
  0xa4   : > { %2695 = vmatmul.msk.f32.gmra.mxu2 %vm358_vm1, %v3478_v40  ;;  %2685 = vmatmul.msk.f32.gmra.mxu1 %vm358_vm1, %v3462_v35 }
  0xa6   : > { %v3496_v48 = vpop.f32.mrf.mxu0 }
  0xa7   : > { %v3498_v49 = vpop.f32.mrf.mxu2 }
  0xa8   : > { %2666 = vmatmul.msk.f32.gmra.mxu3 %vm358_vm1, %v3334_v11 }
  0xa9   : > { %v3505_v51 = vpop.f32.mrf.mxu1  ;;  %2676 = vmatmul.msk.f32.gmra.mxu0 %vm358_vm1, %v3330_v10  ;;  %v3567_v10 = vsel %vm444_vm3, %v1107_v3, %v1108_v4  ;;  %v428_v3 = vadd.f32 %v3526_v58, %v3473_v39 }
  0xab   : > { %v425_v54 = vpop.f32.mrf.mxu3 }
  0xac   : > { %2696 = vmatmul.msk.f32.gmra.mxu2 %vm358_vm1, %v3503_v50  ;;  %2686 = vmatmul.msk.f32.gmra.mxu1 %vm358_vm1, %v3485_v42 }
  0xae   : > { %v3521_v57 = vpop.f32.mrf.mxu0 }
  0xaf   : > { %v3528_v59 = vpop.f32.mrf.mxu2  ;;  %v430_v36 = vadd.f32 %v3526_v58, %v3521_v57 }
  0xb0   : > { %2667 = vmatmul.msk.f32.gmra.mxu3 %vm358_vm1, %v3246_v33  ;;  %v434_v33 = vadd.f32 %v3526_v58, %v422_v44  ;;  %v928_v44 = vrot.slane %v356_v20, 2  ;;  %v1192_v20 = vrot.slane %v3462_v35, 2 }
  0xb1   : > { %v3535_v62 = vpop.f32.mrf.mxu1  ;;  %2677 = vmatmul.msk.f32.gmra.mxu0 %vm358_vm1, %v3302_v60 }
  0xb2   : > { %v929_v55 = vsel %vm539_vm2, %v927_v31, %v928_v44 }
  0xb3   : > { %v525_v2 = vpop.f32.mrf.mxu3 }
  0xb4   : > { %2697 = vmatmul.msk.f32.gmra.mxu2 %vm358_vm1, %v3533_v61  ;;  %2687 = vmatmul.msk.f32.gmra.mxu1 %vm358_vm1, %v3510_v52  ;;  %v537_v60 = vadd.f32 %v525_v2, %v434_v33  ;;  %v1186_v2 = vrot.slane %v3427_v24, 2 }
  0xb6   : > { %v3556_v5 = vpop.f32.mrf.mxu0 }
  0xb7   : > { %v3558_v7 = vpop.f32.mrf.mxu2 }
  0xb8   : > { %2668 = vmatmul.msk.f32.gmra.mxu3 %vm358_vm1, %v3275_v47  ;;  %v435_v47 = vadd.f32 %v3526_v58, %v425_v54 }
  0xb9   : > { %v3569_v11 = vpop.f32.mrf.mxu1  ;;  %2678 = vmatmul.msk.f32.gmra.mxu0 %vm358_vm1, %v3325_v9 }
  0xbb   : > { %v528_v6 = vpop.f32.mrf.mxu3 }
  0xbc   : > { %2698 = vmatmul.msk.f32.gmra.mxu2 %vm358_vm1, %v3567_v10  ;;  %2688 = vmatmul.msk.f32.gmra.mxu1 %vm358_vm1, %v3543_v0  ;;  %v538_v9 = vadd.f32 %v528_v6, %v435_v47  ;;  %v1189_v47 = vrot.slane %v3444_v29, 2 }
  0xbe   : > { %v3594_v18 = vpop.f32.mrf.mxu0  ;;  %v1191_v39 = vsel %vm539_vm2, %v1189_v47, %v1190_v8 }
  0xbf   : > { %v3596_v19 = vpop.f32.mrf.mxu2 }
  0xc0   : > { %2669 = vmatmul.msk.f32.gmra.mxu3 %vm358_vm1, %v3410_v22 }
  0xc1   : > { %v3605_v28 = vpop.f32.mrf.mxu1  ;;  %2679 = vmatmul.msk.f32.gmra.mxu0 %vm358_vm1, %v3424_v23  ;;  %v1114_v23 = vrot.slane %v3614_v38, 1 }
  0xc3   : > { %v620_v45 = vpop.f32.mrf.mxu3  ;;  %v3632_v63 = vsel %vm444_vm3, %v1113_v46, %v1114_v23 }
  0xc4   : > { %2699 = vmatmul.msk.f32.gmra.mxu2 %vm358_vm1, %v3603_v27  ;;  %2689 = vmatmul.msk.f32.gmra.mxu1 %vm358_vm1, %v3577_v13  ;;  %v3620_v22 = vadd.f32 %v620_v45, %v537_v60  ;;  %v1187_v60 = vrot.slane %v3430_v25, 2  ;;  %v531_v25 = vadd.f32 %v3480_v41, %v428_v3 }
  0xc6   : > { %v3625_v54 = vpop.f32.mrf.mxu0  ;;  %v1188_v24 = vsel %vm539_vm2, %v1186_v2, %v1187_v60  ;;  %v626_v30 = vadd.f32 %v3498_v49, %v531_v25  ;;  %v1198_v25 = vrot.slane %v3510_v52, 2 }
  0xc7   : > { %v3628_v56 = vpop.f32.mrf.mxu2 }
  0xc8   : > { %2670 = vmatmul.msk.f32.gmra.mxu3 %vm358_vm1, %v870_v21  ;;  %v1195_v21 = vrot.slane %v3485_v42, 2 }
  0xc9   : > { %v3634_v33 = vpop.f32.mrf.mxu1  ;;  %2680 = vmatmul.msk.f32.gmra.mxu0 %vm358_vm1, %v929_v55  ;;  %v1196_v55 = vrot.slane %v3488_v43, 2  ;;  %v431_v43 = vadd.f32 %v3526_v58, %v3556_v5 }
  0xcb   : > { %v623_v4 = vpop.f32.mrf.mxu3 }
  0xcc   : > { %2700 = vmatmul.msk.f32.gmra.mxu2 %vm358_vm1, %v3632_v63  ;;  %2690 = vmatmul.msk.f32.gmra.mxu1 %vm358_vm1, %v3611_v37  ;;  %v3646_v12 = vadd.f32 %v623_v4, %v538_v9  ;;  %v429_v9 = vadd.f32 %v3526_v58, %v3496_v48  ;;  %v3668_v48 = vsel %vm539_vm2, %v1192_v20, %v1193_v26 }
  0xcd   : > { %v3687_v4 = vsel %vm539_vm2, %v1195_v21, %v1196_v55 }
  0xce   : > { %v719_v15 = vpop.f32.mrf.mxu0  ;;  %v532_v32 = vadd.f32 %v3505_v51, %v429_v9 }
  0xcf   : > { %v3651_v6 = vpop.f32.mrf.mxu2 }
  0xd0   : > { %2703 = vmatmul.msk.f32.vlgmr.msrb.gmra.mxu3 %vm358_vm1, %v1188_v24 }
  0xd1   : > { %v778_v16 = vpop.f32.mrf.mxu1  ;;  %2713 = vmatmul.msk.f32.vlgmr.msrb.gmra.mxu0 %vm358_vm1, %v3444_v29 }
  0xd3   : > { %v659_v17 = vpop.f32.mrf.mxu3 }
  0xd4   : > { %2733 = vmatmul.msk.f32.vlgmr.msrb.gmra.mxu2 %vm358_vm1, %v1191_v39  ;;  %2723 = vmatmul.msk.f32.vlgmr.msrb.gmra.mxu1 %vm358_vm1, %v3457_v34  ;;  %v683_v41 = vadd.f32 %v659_v17, %v626_v30  ;;  %v627_v34 = vadd.f32 %v3528_v59, %v532_v32  ;;  %v533_v59 = vadd.f32 %v3535_v62, %v430_v36  ;;  %v1201_v32 = vrot.slane %v3543_v0, 2 }
  0xd6   : > { %v722_v31 = vpop.f32.mrf.mxu0  ;;  %v743_v29 = vadd.f32 %v719_v15, %v683_v41  ;;  %v628_v47 = vadd.f32 %v3558_v7, %v533_v59  ;;  %v534_v7 = vadd.f32 %v3569_v11, %v431_v43  ;;  %v1205_v59 = vrot.slane %v3580_v14, 2  ;;  %v2791_v14 = vld [vmem:[%s4357_s3 + $0x50] sm:$0xf] }
  0xd7   : > { %v835_v44 = vpop.f32.mrf.mxu2  ;;  %2792 = vmatpush.msk.msrb.mxu0 %vm383_vm0, %v2791_v14 }
  0xd8   : > { %v802_v49 = vadd.f32 %v778_v16, %v743_v29  ;;  %2704 = vmatmul.msk.f32.gmra.mxu3 %vm358_vm1, %v1191_v39  ;;  %v1199_v39 = vrot.slane %v3513_v53, 2  ;;  %v629_v20 = vadd.f32 %v3596_v19, %v534_v7  ;;  %v432_v53 = vadd.f32 %v3526_v58, %v3594_v18 }
  0xd9   : > { %v781_v45 = vpop.f32.mrf.mxu1  ;;  %2714 = vmatmul.msk.f32.gmra.mxu0 %vm358_vm1, %v3462_v35  ;;  %v1202_v29 = vrot.slane %v3546_v1, 2  ;;  %v2781_v1 = vld [vmem:[%s4357_s3 + $0x4c] sm:$0xf] }
  0xda   : > { %v3675_v46 = vadd.f32 %v835_v44, %v802_v49  ;;  %v3706_v17 = vsel %vm539_vm2, %v1198_v25, %v1199_v39  ;;  %v535_v19 = vadd.f32 %v3605_v28, %v432_v53  ;;  %2782 = vmatpush.msk.msrb.mxu3 %vm383_vm0, %v2781_v1  ;;  %v1207_v39 = vrot.slane %v3611_v37, 2 }
  0xdb   : > { %v662_v51 = vpop.f32.mrf.mxu3 }
  0xdc   : > { %2734 = vmatmul.msk.f32.gmra.mxu2 %vm358_vm1, %v3668_v48  ;;  %2724 = vmatmul.msk.f32.gmra.mxu1 %vm358_vm1, %v3478_v40  ;;  %v684_v23 = vadd.f32 %v662_v51, %v627_v34  ;;  %v3725_v34 = vsel %vm539_vm2, %v1201_v32, %v1202_v29  ;;  %v630_v28 = vadd.f32 %v3628_v56, %v535_v19 }
  0xdd   : > { %v433_v51 = vadd.f32 %v3526_v58, %v3625_v54  ;;  %v2811_v54 = vld [vmem:[%s4357_s3 + $0x58] sm:$0xf] }
  0xde   : > { %v725_v2 = vpop.f32.mrf.mxu0  ;;  %v744_v60 = vadd.f32 %v722_v31, %v684_v23  ;;  %2812 = vmatpush.msk.msrb.mxu2 %vm383_vm0, %v2811_v54 }
  0xdf   : > { %v838_v3 = vpop.f32.mrf.mxu2  ;;  %v536_v56 = vadd.f32 %v3634_v33, %v433_v51 }
  0xe0   : > { %v803_v57 = vadd.f32 %v781_v45, %v744_v60  ;;  %2705 = vmatmul.msk.f32.gmra.mxu3 %vm358_vm1, %v3668_v48 }
  0xe1   : > { %v784_v8 = vpop.f32.mrf.mxu1  ;;  %2715 = vmatmul.msk.f32.gmra.mxu0 %vm358_vm1, %v3485_v42  ;;  %v631_v33 = vadd.f32 %v3651_v6, %v536_v56  ;;  %v1208_v6 = vrot.slane %v3614_v38, 2  ;;  %v1003_v38 = vld [vmem:[%s3415_s13 + $0x88] sm:$0x3] }
  0xe2   : > { %v3694_v24 = vadd.f32 %v838_v3, %v803_v57  ;;  %v1398_v29 = vrot.slane %v1003_v38, 2  ;;  %v1339_v19 = vrot.slane %v1003_v38, 1 }
  0xe3   : > { %v665_v62 = vpop.f32.mrf.mxu3 }
  0xe4   : > { %2735 = vmatmul.msk.f32.gmra.mxu2 %vm358_vm1, %v3687_v4  ;;  %2725 = vmatmul.msk.f32.gmra.mxu1 %vm358_vm1, %v3503_v50  ;;  %v685_v15 = vadd.f32 %v665_v62, %v628_v47  ;;  %v2801_v62 = vld [vmem:[%s4357_s3 + $0x54] sm:$0xf] }
  0xe5   : > { %2802 = vmatpush.msk.msrb.mxu1 %vm383_vm0, %v2801_v62 }
  0xe6   : > { %v728_v16 = vpop.f32.mrf.mxu0  ;;  %v745_v30 = vadd.f32 %v725_v2, %v685_v15  ;;  %v1204_v2 = vrot.slane %v3577_v13, 2 }
  0xe7   : > { %v841_v9 = vpop.f32.mrf.mxu2 }
  0xe8   : > { %v804_v5 = vadd.f32 %v784_v8, %v745_v30  ;;  %2706 = vmatmul.msk.f32.gmra.mxu3 %vm358_vm1, %v3687_v4  ;;  %v3752_v8 = vsel %vm539_vm2, %v1204_v2, %v1205_v59 }
  0xe9   : > { %v787_v41 = vpop.f32.mrf.mxu1  ;;  %2716 = vmatmul.msk.f32.gmra.mxu0 %vm358_vm1, %v3510_v52 }
  0xea   : > { %v3713_v26 = vadd.f32 %v841_v9, %v804_v5  ;;  %v3777_v5 = vsel %vm539_vm2, %v1207_v39, %v1208_v6 }
  0xeb   : > { %v668_v11 = vpop.f32.mrf.mxu3 }
  0xec   : > { %2736 = vmatmul.msk.f32.gmra.mxu2 %vm358_vm1, %v3706_v17  ;;  %2726 = vmatmul.msk.f32.gmra.mxu1 %vm358_vm1, %v3533_v61  ;;  %v686_v31 = vadd.f32 %v668_v11, %v629_v20  ;;  %v3782_v20 = vld [vmem:[%s3415_s13 + $0x80] sm:$0xff] }
  0xee   : > { %v731_v44 = vpop.f32.mrf.mxu0  ;;  %v746_v49 = vadd.f32 %v728_v16, %v686_v31  ;;  %v1397_v31 = vrot.slane %v3782_v20, 2 }
  0xef   : > { %v844_v45 = vpop.f32.mrf.mxu2 }
  0xf0   : > { %v805_v18 = vadd.f32 %v787_v41, %v746_v49  ;;  %2707 = vmatmul.msk.f32.gmra.mxu3 %vm358_vm1, %v3706_v17  ;;  %v3798_v1 = vsel %vm539_vm2, %v1397_v31, %v1398_v29 }
  0xf1   : > { %v790_v36 = vpop.f32.mrf.mxu1  ;;  %2717 = vmatmul.msk.f32.gmra.mxu0 %vm358_vm1, %v3543_v0 }
  0xf2   : > { %v3736_v23 = vadd.f32 %v844_v45, %v805_v18 }
  0xf3   : > { %v671_v21 = vpop.f32.mrf.mxu3 }
  0xf4   : > { %2737 = vmatmul.msk.f32.gmra.mxu2 %vm358_vm1, %v3725_v34  ;;  %2727 = vmatmul.msk.f32.gmra.mxu1 %vm358_vm1, %v3567_v10  ;;  %v687_v55 = vadd.f32 %v671_v21, %v630_v28 }
  0xf6   : > { %v734_v60 = vpop.f32.mrf.mxu0  ;;  %v747_v3 = vadd.f32 %v731_v44, %v687_v55  ;;  %v1338_v44 = vrot.slane %v3782_v20, 1 }
  0xf7   : > { %v847_v58 = vpop.f32.mrf.mxu2 }
  0xf8   : > { %v806_v57 = vadd.f32 %v790_v36, %v747_v3  ;;  %2708 = vmatmul.msk.f32.gmra.mxu3 %vm358_vm1, %v3725_v34  ;;  %v3820_v3 = vld [vmem:[%s3815_s27] sm:$0xff] }
  0xf9   : > { %v793_v47 = vpop.f32.mrf.mxu1  ;;  %2718 = vmatmul.msk.f32.gmra.mxu0 %vm358_vm1, %v3577_v13 }
  0xfa   : > { %v3762_v43 = vadd.f32 %v847_v58, %v806_v57 }
  0xfb   : > { %v674_v15 = vpop.f32.mrf.mxu3 }
  0xfc   : > { %2738 = vmatmul.msk.f32.gmra.mxu2 %vm358_vm1, %v3752_v8  ;;  %2728 = vmatmul.msk.f32.gmra.mxu1 %vm358_vm1, %v3603_v27  ;;  %v688_v25 = vadd.f32 %v674_v15, %v631_v33 }
  0xfe   : > { %v737_v16 = vpop.f32.mrf.mxu0  ;;  %v748_v7 = vadd.f32 %v734_v60, %v688_v25 }
  0xff   : > { %v850_v30 = vpop.f32.mrf.mxu2 }
 0x100   : > { %v807_v9 = vadd.f32 %v793_v47, %v748_v7  ;;  %2709 = vmatmul.msk.f32.gmra.mxu3 %vm358_vm1, %v3752_v8 }
 0x101   : > { %v796_v41 = vpop.f32.mrf.mxu1  ;;  %2719 = vmatmul.msk.f32.gmra.mxu0 %vm358_vm1, %v3611_v37 }
 0x102   : > { %v3785_v53 = vadd.f32 %v850_v30, %v807_v9 }
 0x103   : > { %v677_v11 = vpop.f32.mrf.mxu3 }
 0x104   : > { %2739 = vmatmul.msk.f32.gmra.mxu2 %vm358_vm1, %v3777_v5  ;;  %2729 = vmatmul.msk.f32.gmra.mxu1 %vm358_vm1, %v3632_v63  ;;  %v689_v32 = vadd.f32 %v677_v11, %v3620_v22  ;;  %v3803_v22 = vsel %vm444_vm3, %v1338_v44, %v1339_v19  ;;  %v3876_v44 = vld [vmem:[%s3815_s27 + $0x40] sm:$0xff] }
 0x106   : > { %v740_v49 = vpop.f32.mrf.mxu0  ;;  %v749_v45 = vadd.f32 %v737_v16, %v689_v32 }
 0x107   : > { %v853_v18 = vpop.f32.mrf.mxu2 }
 0x108   : > { %v808_v36 = vadd.f32 %v796_v41, %v749_v45  ;;  %2710 = vmatmul.msk.f32.gmra.mxu3 %vm358_vm1, %v3777_v5 }
 0x109   : > { %v799_v28 = vpop.f32.mrf.mxu1  ;;  %2720 = vmatmul.msk.f32.gmra.mxu0 %vm358_vm1, %v3782_v20 }
 0x10a   : > { %v3805_v51 = vadd.f32 %v853_v18, %v808_v36  ;;  %v2851_v18 = vld [vmem:[%s4357_s3 + $0x68] sm:$0xf] }
 0x10b   : > { %v680_v21 = vpop.f32.mrf.mxu3 }
 0x10c   : > { %2740 = vmatmul.msk.f32.gmra.mxu2 %vm358_vm1, %v3798_v1  ;;  %2730 = vmatmul.msk.f32.gmra.mxu1 %vm358_vm1, %v3803_v22  ;;  %v690_v55 = vadd.f32 %v680_v21, %v3646_v12 }
 0x10e   : > { %v954_v2 = vpop.f32.mrf.mxu0  ;;  %v750_v59 = vadd.f32 %v740_v49, %v690_v55 }
 0x10f   : > { %v856_v60 = vpop.f32.mrf.mxu2 }
 0x110   : > { %v809_v56 = vadd.f32 %v799_v28, %v750_v59  ;;  %2743 = vmatmul.msk.f32.vlgmr.msra.gmra.mxu3 %vm358_vm1, %v3462_v35  ;;  %v3898_v28 = vld [vmem:[%s3815_s27 + $0x50] sm:$0xff] }
 0x111   : > { %v1052_v58 = vpop.f32.mrf.mxu1  ;;  %2753 = vmatmul.msk.f32.vlgmr.msra.gmra.mxu0 %vm358_vm1, %v3478_v40  ;;  %v3834_v40 = vld [vmem:[%s3815_s27 + $0x10] sm:$0xff] }
 0x112   : > { %v3824_v12 = vadd.f32 %v856_v60, %v809_v56  ;;  %v1005_v56 = vld [vmem:[%s3415_s13 + $0x98] sm:$0x3] }
 0x113   : > { %v895_v54 = vpop.f32.mrf.mxu3 }
 0x114   : > { %2773 = vmatmul.msk.f32.vlgmr.msra.gmra.mxu2 %vm358_vm1, %v3820_v3  ;;  %2763 = vmatmul.msk.f32.vlgmr.msra.gmra.mxu1 %vm358_vm1, %v3668_v48  ;;  %v919_v57 = vadd.f32 %v895_v54, %v3675_v46  ;;  %v3921_v54 = vld [vmem:[%s3815_s27 + $0x60] sm:$0xff] }
 0x115   : > { %2852 = vmatpush.msk.msra.mxu2 %vm383_vm0, %v2851_v18 }
 0x116   : > { %v957_v47 = vpop.f32.mrf.mxu0  ;;  %v978_v14 = vadd.f32 %v954_v2, %v919_v57 }
 0x117   : > { %v1154_v35 = vpop.f32.mrf.mxu2 }
 0x118   : > { %v1076_v33 = vadd.f32 %v1052_v58, %v978_v14  ;;  %2744 = vmatmul.msk.f32.gmra.mxu3 %vm358_vm1, %v3485_v42 }
 0x119   : > { %v1055_v62 = vpop.f32.mrf.mxu1  ;;  %2754 = vmatmul.msk.f32.gmra.mxu0 %vm358_vm1, %v3503_v50  ;;  %v3848_v50 = vld [vmem:[%s3815_s27 + $0x20] sm:$0xff] }
 0x11a   : > { %v3838_v15 = vadd.f32 %v1154_v35, %v1076_v33 }
 0x11b   : > { %v898_v25 = vpop.f32.mrf.mxu3 }
 0x11c   : > { %2774 = vmatmul.msk.f32.gmra.mxu2 %vm358_vm1, %v3834_v40  ;;  %2764 = vmatmul.msk.f32.gmra.mxu1 %vm358_vm1, %v3687_v4  ;;  %v920_v48 = vadd.f32 %v898_v25, %v3694_v24 }
 0x11e   : > { %v960_v46 = vpop.f32.mrf.mxu0  ;;  %v979_v39 = vadd.f32 %v957_v47, %v920_v48  ;;  %v1004_v47 = vld [vmem:[%s3415_s13 + $0x90] sm:$0xff]  ;;  %s299_s13 = sand.u32 1, %s3034_s19  }
 0x11f   : > { %v1157_v42 = vpop.f32.mrf.mxu2  ;;  %v1573_v33 = vrot.slane %v1004_v47, 2  ;;  %s2588_s14 = sshll.u32 %s299_s13, 6  ;;  %s2439_s8 = scalar_lea.sflag [#allocation3], %s299_s13 }
 0x120   : > { %v1077_v6 = vadd.f32 %v1055_v62, %v979_v39  ;;  %2745 = vmatmul.msk.f32.gmra.mxu3 %vm358_vm1, %v3510_v52  ;;  %v1574_v62 = vrot.slane %v1005_v56, 2  ;;  %v1633_v39 = vld [vmem:[%s3815_s27 + $0x8] sm:$0x3]  ;;  %s4291_s17 = scalar_lea.vmem [#allocation2], %s2588_s14 }
 0x121   : > { %v1058_v16 = vpop.f32.mrf.mxu1  ;;  %2755 = vmatmul.msk.f32.gmra.mxu0 %vm358_vm1, %v3533_v61  ;;  %v3862_v61 = vld [vmem:[%s3815_s27 + $0x30] sm:$0xff]  ;;  %s2453_s12 = sshll.u32 %s4291_s17, 4  ;;  %s2454_s12 = int_to_ptr.vmem [resolvable:$true] %s2453_s12 }
 0x122   : > { %v3852_v7 = vadd.f32 %v1157_v42, %v1077_v6  ;;  %v3937_v6 = vld [vmem:[%s3815_s27 + $0x70] sm:$0xff] }
 0x123   : > { %v901_v30 = vpop.f32.mrf.mxu3 }
 0x124   : > { %2775 = vmatmul.msk.f32.gmra.mxu2 %vm358_vm1, %v3848_v50  ;;  %2765 = vmatmul.msk.f32.gmra.mxu1 %vm358_vm1, %v3706_v17  ;;  %v921_v4 = vadd.f32 %v901_v30, %v3713_v26  ;;  %v1832_v30 = vrot.slane %v3820_v3, 2 }
 0x126   : > { %v963_v24 = vpop.f32.mrf.mxu0  ;;  %v980_v9 = vadd.f32 %v960_v46, %v921_v4  ;;  %v1739_v4 = vrot.slane %v1633_v39, 1 }
 0x127   : > { %v1160_v52 = vpop.f32.mrf.mxu2 }
 0x128   : > { %v1078_v41 = vadd.f32 %v1058_v16, %v980_v9  ;;  %2746 = vmatmul.msk.f32.gmra.mxu3 %vm358_vm1, %v3543_v0  ;;  %v1833_v9 = vrot.slane %v1633_v39, 2 }
 0x129   : > { %v1061_v38 = vpop.f32.mrf.mxu1  ;;  %2756 = vmatmul.msk.f32.gmra.mxu0 %vm358_vm1, %v3567_v10 }
 0x12a   : > { %v3866_v11 = vadd.f32 %v1160_v52, %v1078_v41 }
 0x12b   : > { %v904_v31 = vpop.f32.mrf.mxu3 }
 0x12c   : > { %2776 = vmatmul.msk.f32.gmra.mxu2 %vm358_vm1, %v3862_v61  ;;  %2766 = vmatmul.msk.f32.gmra.mxu1 %vm358_vm1, %v3725_v34  ;;  %v922_v17 = vadd.f32 %v904_v31, %v3736_v23  ;;  %v2821_v34 = vld [vmem:[%s4357_s3 + $0x5c] sm:$0xf] }
 0x12d   : > { %2822 = vmatpush.msk.msra.mxu3 %vm383_vm0, %v2821_v34 }
 0x12e   : > { %v966_v26 = vpop.f32.mrf.mxu0  ;;  %v981_v32 = vadd.f32 %v963_v24, %v922_v17  ;;  %v1635_v24 = vld [vmem:[%s3815_s27 + $0x18] sm:$0x3] }
 0x12f   : > { %v1163_v0 = vpop.f32.mrf.mxu2  ;;  %v1742_v17 = vrot.slane %v1635_v24, 1 }
 0x130   : > { %v1079_v29 = vadd.f32 %v1061_v38, %v981_v32  ;;  %2747 = vmatmul.msk.f32.gmra.mxu3 %vm358_vm1, %v3577_v13  ;;  %v1741_v38 = vrot.slane %v3834_v40, 1  ;;  %v1834_v32 = vsel %vm539_vm2, %v1832_v30, %v1833_v9 }
 0x131   : > { %v1064_v10 = vpop.f32.mrf.mxu1  ;;  %2757 = vmatmul.msk.f32.gmra.mxu0 %vm358_vm1, %v3603_v27 }
 0x132   : > { %v3884_v23 = vadd.f32 %v1163_v0, %v1079_v29  ;;  %v1743_v34 = vsel %vm444_vm3, %v1741_v38, %v1742_v17 }
 0x133   : > { %v907_v19 = vpop.f32.mrf.mxu3 }
 0x134   : > { %2777 = vmatmul.msk.f32.gmra.mxu2 %vm358_vm1, %v3876_v44  ;;  %2767 = vmatmul.msk.f32.gmra.mxu1 %vm358_vm1, %v3752_v8  ;;  %v923_v13 = vadd.f32 %v907_v19, %v3762_v43  ;;  %v2831_v8 = vld [vmem:[%s4357_s3 + $0x60] sm:$0xf] }
 0x135   : > { %2832 = vmatpush.msk.msra.mxu0 %vm383_vm0, %v2831_v8 }
 0x136   : > { %v969_v49 = vpop.f32.mrf.mxu0  ;;  %v982_v45 = vadd.f32 %v966_v26, %v923_v13  ;;  %v1835_v13 = vrot.slane %v3834_v40, 2 }
 0x137   : > { %v1166_v27 = vpop.f32.mrf.mxu2 }
 0x138   : > { %v1080_v36 = vadd.f32 %v1064_v10, %v982_v45  ;;  %2748 = vmatmul.msk.f32.gmra.mxu3 %vm358_vm1, %v3611_v37  ;;  %v2841_v37 = vld [vmem:[%s4357_s3 + $0x64] sm:$0xf] }
 0x139   : > { %v1067_v21 = vpop.f32.mrf.mxu1  ;;  %2758 = vmatmul.msk.f32.gmra.mxu0 %vm358_vm1, %v3632_v63  ;;  %2842 = vmatpush.msk.msra.mxu1 %vm383_vm0, %v2841_v37 }
 0x13a   : > { %v3906_v43 = vadd.f32 %v1166_v27, %v1080_v36  ;;  %v1744_v36 = vrot.slane %v3848_v50, 1 }
 0x13b   : > { %v910_v55 = vpop.f32.mrf.mxu3 }
 0x13c   : > { %2778 = vmatmul.msk.f32.gmra.mxu2 %vm358_vm1, %v3898_v28  ;;  %2768 = vmatmul.msk.f32.gmra.mxu1 %vm358_vm1, %v3777_v5  ;;  %v924_v63 = vadd.f32 %v910_v55, %v3785_v53  ;;  %v1514_v5 = vrot.slane %v1004_v47, 1  ;;  %v1515_v53 = vrot.slane %v1005_v56, 1 }
 0x13e   : > { %v972_v2 = vpop.f32.mrf.mxu0  ;;  %v983_v59 = vadd.f32 %v969_v49, %v924_v63  ;;  %v1637_v49 = vld [vmem:[%s3815_s27 + $0x28] sm:$0x3] }
 0x13f   : > { %v1169_v60 = vpop.f32.mrf.mxu2  ;;  %v1839_v56 = vrot.slane %v1637_v49, 2 }
 0x140   : > { %v1081_v58 = vadd.f32 %v1067_v21, %v983_v59  ;;  %2749 = vmatmul.msk.f32.gmra.mxu3 %vm358_vm1, %v3782_v20  ;;  %v1745_v21 = vrot.slane %v1637_v49, 1 }
 0x141   : > { %v1070_v57 = vpop.f32.mrf.mxu1  ;;  %2759 = vmatmul.msk.f32.gmra.mxu0 %vm358_vm1, %v3803_v22  ;;  %v1516_v22 = vsel %vm444_vm3, %v1514_v5, %v1515_v53  ;;  %v1747_v5 = vrot.slane %v3862_v61, 1 }
 0x142   : > { %v3926_v14 = vadd.f32 %v1169_v60, %v1081_v58  ;;  %v3970_v59 = vsel %vm444_vm3, %v1744_v36, %v1745_v21  ;;  %v1847_v21 = vrot.slane %v3898_v28, 2 }
 0x143   : > { %v913_v35 = vpop.f32.mrf.mxu3 }
 0x144   : > { %2779 = vmatmul.msk.f32.gmra.mxu2 %vm358_vm1, %v3921_v54  ;;  %2769 = vmatmul.msk.f32.gmra.mxu1 %vm358_vm1, %v3798_v1  ;;  %v925_v20 = vadd.f32 %v913_v35, %v3805_v51  ;;  %v1575_v1 = vsel %vm539_vm2, %v1573_v33, %v1574_v62  ;;  %v1738_v51 = vrot.slane %v3820_v3, 1 }
 0x146   : > { %v975_v25 = vpop.f32.mrf.mxu0  ;;  %v984_v48 = vadd.f32 %v972_v2, %v925_v20  ;;  %v1740_v26 = vsel %vm444_vm3, %v1738_v51, %v1739_v4  ;;  %v1750_v51 = vrot.slane %v3876_v44, 1 }
 0x147   : > { %v1172_v46 = vpop.f32.mrf.mxu2 }
 0x148   : > { %v1082_v42 = vadd.f32 %v1070_v57, %v984_v48  ;;  %2750 = vmatmul.msk.f32.gmra.mxu3 %vm358_vm1, %v1004_v47 }
 0x149   : > { %v1073_v16 = vpop.f32.mrf.mxu1  ;;  %2760 = vmatmul.msk.f32.gmra.mxu0 %vm358_vm1, %v1516_v22 }
 0x14a   : > { %v3944_v52 = vadd.f32 %v1172_v46, %v1082_v42  ;;  %v1841_v46 = vrot.slane %v3862_v61, 2 }
 0x14b   : > { %v916_v41 = vpop.f32.mrf.mxu3 }
 0x14c   : > { %2780 = vmatmul.msk.f32.gmra.mxu2 %vm358_vm1, %v3937_v6  ;;  %2770 = vmatmul.msk.f32.gmra.mxu1 %vm358_vm1, %v1575_v1  ;;  %v926_v31 = vadd.f32 %v916_v41, %v3824_v12  ;;  %v1836_v12 = vrot.slane %v1635_v24, 2 }
 0x14e   : > { %v1305_v3 = vpop.f32.mrf.mxu0  ;;  %v985_v0 = vadd.f32 %v975_v25, %v926_v31  ;;  %v3966_v37 = vsel %vm539_vm2, %v1835_v13, %v1836_v12 }
 0x14f   : > { %v1175_v29 = vpop.f32.mrf.mxu2 }
 0x150   : > { %v1083_v10 = vadd.f32 %v1073_v16, %v985_v0  ;;  %2783 = vmatmul.msk.f32.vlgmr.msrb.gmra.mxu3 %vm358_vm1, %v1740_v26  ;;  %v1844_v26 = vrot.slane %v3876_v44, 2 }
 0x151   : > { %v1365_v19 = vpop.f32.mrf.mxu1  ;;  %2793 = vmatmul.msk.f32.vlgmr.msrb.gmra.mxu0 %vm358_vm1, %v1834_v32 }
 0x152   : > { %v3958_v45 = vadd.f32 %v1175_v29, %v1083_v10  ;;  %v1753_v10 = vrot.slane %v3898_v28, 1 }
 0x153   : > { %v1248_v27 = vpop.f32.mrf.mxu3 }
 0x154   : > { %2813 = vmatmul.msk.f32.vlgmr.msrb.gmra.mxu2 %vm358_vm1, %v1743_v34  ;;  %2803 = vmatmul.msk.f32.vlgmr.msrb.gmra.mxu1 %vm358_vm1, %v3834_v40  ;;  %v1272_v18 = vadd.f32 %v1248_v27, %v3838_v15  ;;  %v1639_v40 = vld [vmem:[%s3815_s27 + $0x38] sm:$0x3]  ;;  %v1838_v15 = vrot.slane %v3848_v50, 2 }
 0x155   : > { %v1748_v53 = vrot.slane %v1639_v40, 1  ;;  %v1842_v39 = vrot.slane %v1639_v40, 2 }
 0x156   : > { %v1308_v8 = vpop.f32.mrf.mxu0  ;;  %v1329_v55 = vadd.f32 %v1305_v3, %v1272_v18  ;;  %v3985_v20 = vsel %vm539_vm2, %v1838_v15, %v1839_v56 }
 0x157   : > { %v1424_v63 = vpop.f32.mrf.mxu2  ;;  %v3990_v22 = vsel %vm444_vm3, %v1747_v5, %v1748_v53  ;;  %v4005_v24 = vsel %vm539_vm2, %v1841_v46, %v1842_v39  ;;  %v1759_v46 = vrot.slane %v3937_v6, 1 }
 0x158   : > { %v1389_v2 = vadd.f32 %v1365_v19, %v1329_v55  ;;  %2784 = vmatmul.msk.f32.gmra.mxu3 %vm358_vm1, %v1743_v34 }
 0x159   : > { %v1368_v60 = vpop.f32.mrf.mxu1  ;;  %2794 = vmatmul.msk.f32.gmra.mxu0 %vm358_vm1, %v3966_v37 }
 0x15a   : > { %v3976_v58 = vadd.f32 %v1424_v63, %v1389_v2 }
 0x15b   : > { %v1251_v57 = vpop.f32.mrf.mxu3 }
 0x15c   : > { %2814 = vmatmul.msk.f32.gmra.mxu2 %vm358_vm1, %v3970_v59  ;;  %2804 = vmatmul.msk.f32.gmra.mxu1 %vm358_vm1, %v3848_v50  ;;  %v1273_v47 = vadd.f32 %v1251_v57, %v3852_v7  ;;  %v1641_v7 = vld [vmem:[%s3815_s27 + $0x48] sm:$0x3] }
 0x15d   : > { %v1751_v30 = vrot.slane %v1641_v7, 1  ;;  %v1845_v3 = vrot.slane %v1641_v7, 2 }
 0x15e   : > { %v1311_v35 = vpop.f32.mrf.mxu0  ;;  %v1330_v33 = vadd.f32 %v1308_v8, %v1273_v47 }
 0x15f   : > { %v1427_v62 = vpop.f32.mrf.mxu2  ;;  %v4010_v31 = vsel %vm444_vm3, %v1750_v51, %v1751_v30  ;;  %v4025_v13 = vsel %vm539_vm2, %v1844_v26, %v1845_v3 }
 0x160   : > { %v1390_v25 = vadd.f32 %v1368_v60, %v1330_v33  ;;  %2785 = vmatmul.msk.f32.gmra.mxu3 %vm358_vm1, %v3970_v59  ;;  %v1756_v60 = vrot.slane %v3921_v54, 1  ;;  %v1850_v33 = vrot.slane %v3921_v54, 2 }
 0x161   : > { %v1371_v48 = vpop.f32.mrf.mxu1  ;;  %2795 = vmatmul.msk.f32.gmra.mxu0 %vm358_vm1, %v3985_v20 }
 0x162   : > { %v3996_v42 = vadd.f32 %v1427_v62, %v1390_v25 }
 0x163   : > { %v1254_v16 = vpop.f32.mrf.mxu3 }
 0x164   : > { %2815 = vmatmul.msk.f32.gmra.mxu2 %vm358_vm1, %v3990_v22  ;;  %2805 = vmatmul.msk.f32.gmra.mxu1 %vm358_vm1, %v3862_v61  ;;  %v1274_v1 = vadd.f32 %v1254_v16, %v3866_v11  ;;  %v1643_v11 = vld [vmem:[%s3815_s27 + $0x58] sm:$0x3] }
 0x165   : > { %v1754_v34 = vrot.slane %v1643_v11, 1  ;;  %v1848_v8 = vrot.slane %v1643_v11, 2 }
 0x166   : > { %v1314_v4 = vpop.f32.mrf.mxu0  ;;  %v1331_v9 = vadd.f32 %v1311_v35, %v1274_v1 }
 0x167   : > { %v1430_v41 = vpop.f32.mrf.mxu2  ;;  %v4030_v18 = vsel %vm444_vm3, %v1753_v10, %v1754_v34  ;;  %v4045_v56 = vsel %vm539_vm2, %v1847_v21, %v1848_v8 }
 0x168   : > { %v1391_v38 = vadd.f32 %v1371_v48, %v1331_v9  ;;  %2786 = vmatmul.msk.f32.gmra.mxu3 %vm358_vm1, %v3990_v22 }
 0x169   : > { %v1374_v17 = vpop.f32.mrf.mxu1  ;;  %2796 = vmatmul.msk.f32.gmra.mxu0 %vm358_vm1, %v4005_v24 }
 0x16a   : > { %v4016_v32 = vadd.f32 %v1430_v41, %v1391_v38  ;;  %v4078_v38 = vld [vmem:[%s3815_s27 + $0x88] sm:$0x3] }
 0x16b   : > { %v1257_v0 = vpop.f32.mrf.mxu3  ;;  %v1985_v10 = vrot.slane %v4078_v38, 1 }
 0x16c   : > { %2816 = vmatmul.msk.f32.gmra.mxu2 %vm358_vm1, %v4010_v31  ;;  %2806 = vmatmul.msk.f32.gmra.mxu1 %vm358_vm1, %v3876_v44  ;;  %v1275_v29 = vadd.f32 %v1257_v0, %v3884_v23  ;;  %v1645_v23 = vld [vmem:[%s3815_s27 + $0x68] sm:$0x3] }
 0x16d   : > { %v1757_v40 = vrot.slane %v1645_v23, 1  ;;  %v1851_v62 = vrot.slane %v1645_v23, 2 }
 0x16e   : > { %v1317_v19 = vpop.f32.mrf.mxu0  ;;  %v1332_v49 = vadd.f32 %v1314_v4, %v1275_v29 }
 0x16f   : > { %v1433_v12 = vpop.f32.mrf.mxu2  ;;  %v4050_v53 = vsel %vm444_vm3, %v1756_v60, %v1757_v40  ;;  %v4065_v1 = vsel %vm539_vm2, %v1850_v33, %v1851_v62 }
 0x170   : > { %v1392_v27 = vadd.f32 %v1374_v17, %v1332_v49  ;;  %2787 = vmatmul.msk.f32.gmra.mxu3 %vm358_vm1, %v4010_v31  ;;  %v1853_v17 = vrot.slane %v3937_v6, 2 }
 0x171   : > { %v1377_v36 = vpop.f32.mrf.mxu1  ;;  %2797 = vmatmul.msk.f32.gmra.mxu0 %vm358_vm1, %v4025_v13 }
 0x172   : > { %v4036_v55 = vadd.f32 %v1433_v12, %v1392_v27 }
 0x173   : > { %v1260_v63 = vpop.f32.mrf.mxu3 }
 0x174   : > { %2817 = vmatmul.msk.f32.gmra.mxu2 %vm358_vm1, %v4030_v18  ;;  %2807 = vmatmul.msk.f32.gmra.mxu1 %vm358_vm1, %v3898_v28  ;;  %v1276_v2 = vadd.f32 %v1260_v63, %v3906_v43  ;;  %v1647_v43 = vld [vmem:[%s3815_s27 + $0x78] sm:$0x3] }
 0x175   : > { %v1760_v39 = vrot.slane %v1647_v43, 1  ;;  %v1854_v11 = vrot.slane %v1647_v43, 2 }
 0x176   : > { %v1320_v15 = vpop.f32.mrf.mxu0  ;;  %v1333_v57 = vadd.f32 %v1317_v19, %v1276_v2 }
 0x177   : > { %v1436_v47 = vpop.f32.mrf.mxu2  ;;  %v4070_v9 = vsel %vm444_vm3, %v1759_v46, %v1760_v39  ;;  %v4091_v19 = vsel %vm539_vm2, %v1853_v17, %v1854_v11 }
 0x178   : > { %v1393_v5 = vadd.f32 %v1377_v36, %v1333_v57  ;;  %2788 = vmatmul.msk.f32.gmra.mxu3 %vm358_vm1, %v4030_v18 }
 0x179   : > { %v1380_v35 = vpop.f32.mrf.mxu1  ;;  %2798 = vmatmul.msk.f32.gmra.mxu0 %vm358_vm1, %v4045_v56 }
 0x17a   : > { %v4056_v25 = vadd.f32 %v1436_v47, %v1393_v5 }
 0x17b   : > { %v1263_v48 = vpop.f32.mrf.mxu3 }
 0x17c   : > { %2818 = vmatmul.msk.f32.gmra.mxu2 %vm358_vm1, %v4050_v53  ;;  %2808 = vmatmul.msk.f32.gmra.mxu1 %vm358_vm1, %v3921_v54  ;;  %v1277_v7 = vadd.f32 %v1263_v48, %v3926_v14  ;;  %v4075_v14 = vld [vmem:[%s3815_s27 + $0x80] sm:$0xff] }
 0x17d   : > { %v1984_v29 = vrot.slane %v4075_v14, 1 }
 0x17e   : > { %v1323_v16 = vpop.f32.mrf.mxu0  ;;  %v1334_v51 = vadd.f32 %v1320_v15, %v1277_v7 }
 0x17f   : > { %v1439_v30 = vpop.f32.mrf.mxu2  ;;  %v4096_v36 = vsel %vm444_vm3, %v1984_v29, %v1985_v10 }
 0x180   : > { %v1394_v4 = vadd.f32 %v1380_v35, %v1334_v51  ;;  %2789 = vmatmul.msk.f32.gmra.mxu3 %vm358_vm1, %v4050_v53 }
 0x181   : > { %v1383_v41 = vpop.f32.mrf.mxu1  ;;  %2799 = vmatmul.msk.f32.gmra.mxu0 %vm358_vm1, %v4065_v1 }
 0x182   : > { %v4081_v26 = vadd.f32 %v1439_v30, %v1394_v4 }
 0x183   : > { %v1266_v3 = vpop.f32.mrf.mxu3 }
 0x184   : > { %2819 = vmatmul.msk.f32.gmra.mxu2 %vm358_vm1, %v4070_v9  ;;  %2809 = vmatmul.msk.f32.gmra.mxu1 %vm358_vm1, %v3937_v6  ;;  %v1278_v0 = vadd.f32 %v1266_v3, %v3944_v52 }
 0x186   : > { %v1326_v34 = vpop.f32.mrf.mxu0  ;;  %v1335_v49 = vadd.f32 %v1323_v16, %v1278_v0 }
 0x187   : > { %v1442_v12 = vpop.f32.mrf.mxu2 }
 0x188   : > { %v1395_v27 = vadd.f32 %v1383_v41, %v1335_v49  ;;  %2790 = vmatmul.msk.f32.gmra.mxu3 %vm358_vm1, %v4070_v9 }
 0x189   : > { %v1386_v23 = vpop.f32.mrf.mxu1  ;;  %2800 = vmatmul.msk.f32.gmra.mxu0 %vm358_vm1, %v4091_v19 }
 0x18a   : > { %v4100_v52 = vadd.f32 %v1442_v12, %v1395_v27 }
 0x18b   : > { %v1269_v21 = vpop.f32.mrf.mxu3 }
 0x18c   : > { %2820 = vmatmul.msk.f32.gmra.mxu2 %vm358_vm1, %v4096_v36  ;;  %2810 = vmatmul.msk.f32.gmra.mxu1 %vm358_vm1, %v4075_v14  ;;  %v1279_v8 = vadd.f32 %v1269_v21, %v3958_v45 }
 0x18e   : > { %v1541_v63 = vpop.f32.mrf.mxu0  ;;  %v1336_v2 = vadd.f32 %v1326_v34, %v1279_v8  ;;  %v1651_v8 = vld [vmem:[%s3815_s27 + $0x98] sm:$0x3] }
 0x18f   : > { %v1445_v60 = vpop.f32.mrf.mxu2 }
 0x190   : > { %v1396_v40 = vadd.f32 %v1386_v23, %v1336_v2  ;;  %2823 = vmatmul.msk.f32.vlgmr.msra.gmra.mxu3 %vm358_vm1, %v3966_v37 }
 0x191   : > { %v1600_v15 = vpop.f32.mrf.mxu1  ;;  %2833 = vmatmul.msk.f32.vlgmr.msra.gmra.mxu0 %vm358_vm1, %v3848_v50 }
 0x192   : > { %v4111_v57 = vadd.f32 %v1445_v60, %v1396_v40  ;;  %v2161_v40 = vrot.slane %v1651_v8, 1 }
 0x193   : > { %v1481_v47 = vpop.f32.mrf.mxu3 }
 0x194   : > { %2853 = vmatmul.msk.f32.vlgmr.msra.gmra.mxu2 %vm358_vm1, %v3985_v20  ;;  %2843 = vmatmul.msk.f32.vlgmr.msra.gmra.mxu1 %vm358_vm1, %v3970_v59  ;;  %v1505_v45 = vadd.f32 %v1481_v47, %v3976_v58 }
 0x196   : > { %v1544_v5 = vpop.f32.mrf.mxu0  ;;  %v1565_v35 = vadd.f32 %v1541_v63, %v1505_v45 }
 0x197   : > { %v1698_v43 = vpop.f32.mrf.mxu2 }
 0x198   : > { %v1624_v33 = vadd.f32 %v1600_v15, %v1565_v35  ;;  %2824 = vmatmul.msk.f32.gmra.mxu3 %vm358_vm1, %v3985_v20 }
 0x199   : > { %v1603_v37 = vpop.f32.mrf.mxu1  ;;  %2834 = vmatmul.msk.f32.gmra.mxu0 %vm358_vm1, %v3862_v61 }
 0x19a   : > { %v4122_v50 = vadd.f32 %v1698_v43, %v1624_v33 }
 0x19b   : > { %v1484_v62 = vpop.f32.mrf.mxu3 }
 0x19c   : > { %2854 = vmatmul.msk.f32.gmra.mxu2 %vm358_vm1, %v4005_v24  ;;  %2844 = vmatmul.msk.f32.gmra.mxu1 %vm358_vm1, %v3990_v22  ;;  %v1506_v59 = vadd.f32 %v1484_v62, %v3996_v42 }
 0x19e   : > { %v1547_v58 = vpop.f32.mrf.mxu0  ;;  %v1566_v48 = vadd.f32 %v1544_v5, %v1506_v59 }
 0x19f   : > { %v1701_v7 = vpop.f32.mrf.mxu2 }
 0x1a0   : > { %v1625_v46 = vadd.f32 %v1603_v37, %v1566_v48  ;;  %2825 = vmatmul.msk.f32.gmra.mxu3 %vm358_vm1, %v4005_v24 }
 0x1a1   : > { %v1606_v20 = vpop.f32.mrf.mxu1  ;;  %2835 = vmatmul.msk.f32.gmra.mxu0 %vm358_vm1, %v3876_v44 }
 0x1a2   : > { %v4133_v61 = vadd.f32 %v1701_v7, %v1625_v46 }
 0x1a3   : > { %v1487_v39 = vpop.f32.mrf.mxu3 }
 0x1a4   : > { %2855 = vmatmul.msk.f32.gmra.mxu2 %vm358_vm1, %v4025_v13  ;;  %2845 = vmatmul.msk.f32.gmra.mxu1 %vm358_vm1, %v4010_v31  ;;  %v1507_v22 = vadd.f32 %v1487_v39, %v4016_v32 }
 0x1a6   : > { %v1550_v42 = vpop.f32.mrf.mxu0  ;;  %v1567_v16 = vadd.f32 %v1547_v58, %v1507_v22 }
 0x1a7   : > { %v1704_v51 = vpop.f32.mrf.mxu2 }
 0x1a8   : > { %v1626_v30 = vadd.f32 %v1606_v20, %v1567_v16  ;;  %2826 = vmatmul.msk.f32.gmra.mxu3 %vm358_vm1, %v4025_v13 }
 0x1a9   : > { %v1609_v24 = vpop.f32.mrf.mxu1  ;;  %2836 = vmatmul.msk.f32.gmra.mxu0 %vm358_vm1, %v3898_v28 }
 0x1aa   : > { %v4144_v44 = vadd.f32 %v1704_v51, %v1626_v30 }
 0x1ab   : > { %v1490_v4 = vpop.f32.mrf.mxu3 }
 0x1ac   : > { %2856 = vmatmul.msk.f32.gmra.mxu2 %vm358_vm1, %v4045_v56  ;;  %2846 = vmatmul.msk.f32.gmra.mxu1 %vm358_vm1, %v4030_v18  ;;  %v1508_v31 = vadd.f32 %v1490_v4, %v4036_v55 }
 0x1ae   : > { %v1553_v32 = vpop.f32.mrf.mxu0  ;;  %v1568_v41 = vadd.f32 %v1550_v42, %v1508_v31 }
 0x1af   : > { %v1707_v17 = vpop.f32.mrf.mxu2 }
 0x1b0   : > { %v1627_v11 = vadd.f32 %v1609_v24, %v1568_v41  ;;  %2827 = vmatmul.msk.f32.gmra.mxu3 %vm358_vm1, %v4045_v56 }
 0x1b1   : > { %v1612_v13 = vpop.f32.mrf.mxu1  ;;  %2837 = vmatmul.msk.f32.gmra.mxu0 %vm358_vm1, %v3921_v54 }
 0x1b2   : > { %v4155_v28 = vadd.f32 %v1707_v17, %v1627_v11 }
 0x1b3   : > { %v1493_v3 = vpop.f32.mrf.mxu3 }
 0x1b4   : > { %2857 = vmatmul.msk.f32.gmra.mxu2 %vm358_vm1, %v4065_v1  ;;  %2847 = vmatmul.msk.f32.gmra.mxu1 %vm358_vm1, %v4050_v53  ;;  %v1509_v18 = vadd.f32 %v1493_v3, %v4056_v25  ;;  %v2043_v25 = vrot.slane %v4075_v14, 2 }
 0x1b6   : > { %v1556_v55 = vpop.f32.mrf.mxu0  ;;  %v1569_v0 = vadd.f32 %v1553_v32, %v1509_v18 }
 0x1b7   : > { %v1710_v29 = vpop.f32.mrf.mxu2 }
 0x1b8   : > { %v1628_v10 = vadd.f32 %v1612_v13, %v1569_v0  ;;  %2828 = vmatmul.msk.f32.gmra.mxu3 %vm358_vm1, %v4065_v1  ;;  %v2044_v1 = vrot.slane %v4078_v38, 2 }
 0x1b9   : > { %v1615_v56 = vpop.f32.mrf.mxu1  ;;  %2838 = vmatmul.msk.f32.gmra.mxu0 %vm358_vm1, %v3937_v6 }
 0x1ba   : > { %v4166_v54 = vadd.f32 %v1710_v29, %v1628_v10  ;;  %v2045_v23 = vsel %vm539_vm2, %v2043_v25, %v2044_v1 }
 0x1bb   : > { %v1496_v34 = vpop.f32.mrf.mxu3 }
 0x1bc   : > { %2858 = vmatmul.msk.f32.gmra.mxu2 %vm358_vm1, %v4091_v19  ;;  %2848 = vmatmul.msk.f32.gmra.mxu1 %vm358_vm1, %v4070_v9  ;;  %v1510_v53 = vadd.f32 %v1496_v34, %v4081_v26  ;;  %v1650_v9 = vld [vmem:[%s3815_s27 + $0x90] sm:$0xff]  ;;  %s2862_s27 = sshll.u32 %s3042_s21, 3 }
 0x1bd   : > { %v2219_v38 = vrot.slane %v1650_v9, 2  ;;  %v2160_v60 = vrot.slane %v1650_v9, 1  ;;  %s2450_s26 = sadd.s32 %s2863_s30, %s2862_s27 }
 0x1be   : > { %v1559_v49 = vpop.f32.mrf.mxu0  ;;  %v1570_v12 = vadd.f32 %v1556_v55, %v1510_v53  ;;  %s2864_s9 = sshll.u32 %s2450_s26, 3  ;;  %s2984_s26 = scalar_lea.hbm %s4359_s5, 1024 }
 0x1bf   : > { %v1713_v6 = vpop.f32.mrf.mxu2  ;;  %v2162_v43 = vsel %vm444_vm3, %v2160_v60, %v2161_v40  ;;  %s2452_s10 = scalar_lea.hbm %s4359_s5, %s2864_s9 }
 0x1c0   : > { %v1629_v27 = vadd.f32 %v1615_v56, %v1570_v12  ;;  %2829 = vmatmul.msk.f32.gmra.mxu3 %vm358_vm1, %v4091_v19  ;;  %v2220_v19 = vrot.slane %v1651_v8, 2  ;;  %s2455_s15 = sshll.u32 %s2452_s10, 4  ;;  %s2456_s15 = int_to_ptr.hbm [resolvable:$true] %s2455_s15 }
 0x1c1   : > { %v1618_v21 = vpop.f32.mrf.mxu1  ;;  %2839 = vmatmul.msk.f32.gmra.mxu0 %vm358_vm1, %v4075_v14  ;;  %s2978_s16 = sshra.s32 %s2456_s15, 4  ;;  %s2979_s16 = int_to_ptr.hbm [resolvable:$true] %s2978_s16 }
 0x1c2   : > { %v4182_v26 = vadd.f32 %v1713_v6, %v1629_v27  ;;  %v2221_v5 = vsel %vm539_vm2, %v2219_v38, %v2220_v19  ;;  %s2980_s14 = scalar_lea.hbm %s2979_s16, 64  ;;  %p2985_p6 = scmp.lt.s32.totalorder %s2979_s16, %s4359_s5 }
 0x1c3   : > { %v1499_v63 = vpop.f32.mrf.mxu3  ;;  %p2981_p2 = scmp.ne.s32.totalorder %s2979_s16, %s2980_s14  ;;  %p2986_p7 = scmp.lt.s32.totalorder %s2984_s26, %s2980_s14 }
 0x1c4   : > { %2859 = vmatmul.msk.f32.gmra.mxu2 %vm358_vm1, %v2045_v23  ;;  %2849 = vmatmul.msk.f32.gmra.mxu1 %vm358_vm1, %v4096_v36  ;;  %v1511_v2 = vadd.f32 %v1499_v63, %v4100_v52 }
 0x1c5   : > { %p2982_p4 = pnand %p2981_p2, %p3143_p3  ;;  %p2987_p9 = por %p2986_p7, %p2985_p6 }
 0x1c6   : > { %v1562_v15 = vpop.f32.mrf.mxu0  ;;  %v1571_v47 = vadd.f32 %v1559_v49, %v1511_v2 }
 0x1c7   : > { %v1716_v45 = vpop.f32.mrf.mxu2  ;;  %p2983_p5 = pneg %p2982_p4 }
 0x1c8   : > { %v1630_v14 = vadd.f32 %v1618_v21, %v1571_v47  ;;  %2830 = vmatmul.msk.f32.gmra.mxu3 %vm358_vm1, %v2045_v23 }
 0x1c9   : > { %v1621_v35 = vpop.f32.mrf.mxu1  ;;  %2840 = vmatmul.msk.f32.gmra.mxu0 %vm358_vm1, %v1650_v9  ;;  %p2988_p10 = pnand %p2987_p9, %p2983_p5 }
 0x1ca   : > { %v4192_v36 = vadd.f32 %v1716_v45, %v1630_v14 }
 0x1cb   : > { %v1502_v33 = vpop.f32.mrf.mxu3 }
 0x1cc   : > { %2860 = vmatmul.msk.f32.gmra.mxu2 %vm358_vm1, %v2221_v5  ;;  %2850 = vmatmul.msk.f32.gmra.mxu1 %vm358_vm1, %v2162_v43  ;;  %v1512_v52 = vadd.f32 %v1502_v33, %v4111_v57 }
 0x1ce   : > { %v1894_v37 = vpop.f32.mrf.mxu0  ;;  %v1572_v62 = vadd.f32 %v1562_v15, %v1512_v52 }
 0x1cf   : > { %v1719_v59 = vpop.f32.mrf.mxu2 }
 0x1d0   : > { %v1631_v58 = vadd.f32 %v1621_v35, %v1572_v62 }
 0x1d1   : > { %v1951_v48 = vpop.f32.mrf.mxu1 }
 0x1d2   : > { %v4197_v7 = vadd.f32 %v1719_v59, %v1631_v58 }
 0x1d3   : > { %v1800_v46 = vpop.f32.mrf.mxu3 }
 0x1d4   : > { %v1824_v25 = vadd.f32 %v1800_v46, %v4122_v50 }
 0x1d6   : > { %v1897_v20 = vpop.f32.mrf.mxu0  ;;  %v1918_v12 = vadd.f32 %v1894_v37, %v1824_v25 }
 0x1d7   : > { %v2011_v39 = vpop.f32.mrf.mxu2 }
 0x1d8   : > { %v1975_v23 = vadd.f32 %v1951_v48, %v1918_v12 }
 0x1d9   : > { %v1954_v22 = vpop.f32.mrf.mxu1 }
 0x1da   : > { %v2035_v63 = vadd.f32 %v2011_v39, %v1975_v23 }
 0x1db   : > { %v1803_v42 = vpop.f32.mrf.mxu3 }
 0x1dc   : > { %v1825_v21 = vadd.f32 %v1803_v42, %v4133_v61 }
 0x1de   : > { %v1900_v16 = vpop.f32.mrf.mxu0  ;;  %v1919_v38 = vadd.f32 %v1897_v20, %v1825_v21 }
 0x1df   : > { %v2014_v51 = vpop.f32.mrf.mxu2 }
 0x1e0   : > { %v1976_v50 = vadd.f32 %v1954_v22, %v1919_v38 }
 0x1e1   : > { %v1957_v30 = vpop.f32.mrf.mxu1 }
 0x1e2   : > { %v2036_v5 = vadd.f32 %v2014_v51, %v1976_v50 }
 0x1e3   : > { %v1806_v24 = vpop.f32.mrf.mxu3 }
 0x1e4   : > { %v1826_v40 = vadd.f32 %v1806_v24, %v4144_v44 }
 0x1e6   : > { %v1903_v4 = vpop.f32.mrf.mxu0  ;;  %v1920_v35 = vadd.f32 %v1900_v16, %v1826_v40 }
 0x1e7   : > { %v2017_v31 = vpop.f32.mrf.mxu2 }
 0x1e8   : > { %v1977_v62 = vadd.f32 %v1957_v30, %v1920_v35 }
 0x1e9   : > { %v1960_v32 = vpop.f32.mrf.mxu1 }
 0x1ea   : > { %v2037_v22 = vadd.f32 %v2017_v31, %v1977_v62 }
 0x1eb   : > { %v1809_v57 = vpop.f32.mrf.mxu3 }
 0x1ec   : > { %v1827_v59 = vadd.f32 %v1809_v57, %v4155_v28 }
 0x1ee   : > { %v4199_v41 = vpop.f32.mrf.mxu0  ;;  %v1921_v42 = vadd.f32 %v1903_v4, %v1827_v59 }
 0x1ef   : > { %v4201_v17 = vpop.f32.mrf.mxu2 }
 0x1f0   : > { %v1978_v12 = vadd.f32 %v1960_v32, %v1921_v42 }
 0x1f1   : > { %v4203_v11 = vpop.f32.mrf.mxu1 }
 0x1f2   : > { %v2038_v4 = vadd.f32 %v4201_v17, %v1978_v12 }
 0x1f3   : > { %v1812_v13 = vpop.f32.mrf.mxu3 }
 0x1f4   : > { %v1828_v28 = vadd.f32 %v1812_v13, %v4166_v54 }
 0x1f6   : > { %v4205_v3 = vpop.f32.mrf.mxu0  ;;  %v1922_v31 = vadd.f32 %v4199_v41, %v1828_v28 }
 0x1f7   : > { %v4207_v18 = vpop.f32.mrf.mxu2 }
 0x1f8   : > { %v1979_v13 = vadd.f32 %v4203_v11, %v1922_v31 }
 0x1f9   : > { %v4209_v55 = vpop.f32.mrf.mxu1 }
 0x1fb   : > { %v4211_v0 = vpop.f32.mrf.mxu3 }
 0x1fe   : > { %v4213_v29 = vpop.f32.mrf.mxu0 }
 0x1ff   : > { %v4215_v10 = vpop.f32.mrf.mxu2 }
 0x201   : > { %v4217_v56 = vpop.f32.mrf.mxu1 }
 0x203   : > { %v4219_v34 = vpop.f32.mrf.mxu3 }
 0x206   : > { %v4221_v53 = vpop.f32.mrf.mxu0 }
 0x207   : > { %v4224_v1 = vpop.f32.mrf.mxu2 }
 0x209   : > { %v4226_v49 = vpop.f32.mrf.mxu1 }
 0x20b   : > { %v4228_v6 = vpop.f32.mrf.mxu3 }
 0x20e   : > { %v2127_v27 = vpop.f32.mrf.mxu0 }
 0x20f   : > { %v4231_v9 = vpop.f32.mrf.mxu2 }
 0x211   : > { %v2187_v8 = vpop.f32.mrf.mxu1 }
 0x213   : > { %v2070_v2 = vpop.f32.mrf.mxu3 }
 0x214   : > { %v2094_v19 = vadd.f32 %v2070_v2, %v2035_v63 }
 0x216   : > { %v2130_v60 = vpop.f32.mrf.mxu0  ;;  %v2151_v15 = vadd.f32 %v2127_v27, %v2094_v19 }
 0x217   : > { %v2246_v47 = vpop.f32.mrf.mxu2 }
 0x218   : > { %v2211_v45 = vadd.f32 %v2187_v8, %v2151_v15 }
 0x219   : > { %v2190_v14 = vpop.f32.mrf.mxu1 }
 0x21a   : > { %v2270_v43 = vadd.f32 %v2246_v47, %v2211_v45  ;;  %v2039_v45 = vadd.f32 %v4207_v18, %v1979_v13 }
 0x21b   : > { %v2073_v33 = vpop.f32.mrf.mxu3 }
 0x21c   : > { %v2286_v61 = vmul.f32 0.2, %v2270_v43  ;;  %v2095_v52 = vadd.f32 %v2073_v33, %v2036_v5  ;;  %vm2278_vm4 = vcmp.gt.f32.partialorder %v2270_v43, 0.0 }
 0x21e   : > { %v2133_v37 = vpop.f32.mrf.mxu0  ;;  %v2152_v58 = vadd.f32 %v2130_v60, %v2095_v52  ;;  %v4235_v46 = vsel %vm2278_vm4, %v2270_v43, %v2286_v61  ;;  %v1829_v60 = vadd.f32 %v4211_v0, %v4182_v26  ;;  %v1830_v0 = vadd.f32 %v4219_v34, %v4192_v36 }
 0x21f   : > { %v2249_v48 = vpop.f32.mrf.mxu2  ;;  %v2302_v44 = vmul.f32 %v4235_v46, %v4235_v46  ;;  %v1831_v34 = vadd.f32 %v4228_v6, %v4197_v7 }
 0x220   : > { %v2212_v20 = vadd.f32 %v2190_v14, %v2152_v58  ;;  %v1923_v14 = vadd.f32 %v4205_v3, %v1829_v60  ;;  %v1924_v58 = vadd.f32 %v4213_v29, %v1830_v0 }
 0x221   : > { %v2193_v39 = vpop.f32.mrf.mxu1  ;;  %2310 = vadd.xlane.f32.xlu0 %v2302_v44 }
 0x222   : > { %v2271_v16 = vadd.f32 %v2249_v48, %v2212_v20  ;;  %v1980_v26 = vadd.f32 %v4209_v55, %v1923_v14  ;;  %v1981_v36 = vadd.f32 %v4217_v56, %v1924_v58 }
 0x223   : > { %v2076_v51 = vpop.f32.mrf.mxu3 }
 0x224   : > { %v2287_v24 = vmul.f32 0.2, %v2271_v16  ;;  %v2096_v25 = vadd.f32 %v2076_v51, %v2037_v22  ;;  %vm2279_vm5 = vcmp.gt.f32.partialorder %v2271_v16, 0.0  ;;  %v2040_v59 = vadd.f32 %v4215_v10, %v1980_v26 }
 0x225   : > { %v2041_v51 = vadd.f32 %v4224_v1, %v1981_v36 }
 0x226   : > { %v2136_v30 = vpop.f32.mrf.mxu0  ;;  %v2153_v57 = vadd.f32 %v2133_v37, %v2096_v25  ;;  %v4240_v23 = vsel %vm2279_vm5, %v2271_v16, %v2287_v24  ;;  %v1925_v24 = vadd.f32 %v4221_v53, %v1831_v34 }
 0x227   : > { %v2252_v27 = vpop.f32.mrf.mxu2  ;;  %v2303_v21 = vmul.f32 %v4240_v23, %v4240_v23 }
 0x228   : > { %v2213_v8 = vadd.f32 %v2193_v39, %v2153_v57  ;;  %v1982_v7 = vadd.f32 %v4226_v49, %v1925_v24 }
 0x229   : > { %v2196_v63 = vpop.f32.mrf.mxu1  ;;  %2312 = vadd.xlane.f32.xlu0 %v2303_v21 }
 0x22a   : > { %v2272_v38 = vadd.f32 %v2252_v27, %v2213_v8  ;;  %v2042_v1 = vadd.f32 %v4231_v9, %v1982_v7 }
 0x22b   : > { %v2079_v2 = vpop.f32.mrf.mxu3 }
 0x22c   : > { %v2288_v19 = vmul.f32 0.2, %v2272_v38  ;;  %v2097_v32 = vadd.f32 %v2079_v2, %v2038_v4  ;;  %vm2280_vm6 = vcmp.gt.f32.partialorder %v2272_v38, 0.0 }
 0x22e   : > { %v2139_v54 = vpop.f32.mrf.mxu0  ;;  %v2154_v50 = vadd.f32 %v2136_v30, %v2097_v32  ;;  %v4249_v15 = vsel %vm2280_vm6, %v2272_v38, %v2288_v19 }
 0x22f   : > { %v2255_v40 = vpop.f32.mrf.mxu2  ;;  %v2304_v17 = vmul.f32 %v4249_v15, %v4249_v15 }
 0x230   : > { %v2214_v47 = vadd.f32 %v2196_v63, %v2154_v50 }
 0x231   : > { %v2199_v41 = vpop.f32.mrf.mxu1  ;;  %2314 = vadd.xlane.f32.xlu1 %v2304_v17 }
 0x232   : > { %v2273_v5 = vadd.f32 %v2255_v40, %v2214_v47 }
 0x233   : > { %v2082_v35 = vpop.f32.mrf.mxu3 }
 0x234   : > { %v2289_v11 = vmul.f32 0.2, %v2273_v5  ;;  %v2098_v43 = vadd.f32 %v2082_v35, %v2039_v45  ;;  %vm2281_vm7 = vcmp.gt.f32.partialorder %v2273_v5, 0.0 }
 0x236   : > { %v2155_v33 = vadd.f32 %v2139_v54, %v2098_v43  ;;  %v4258_v52 = vsel %vm2281_vm7, %v2273_v5, %v2289_v11  ;;  %v2142_v18 = vpop.f32.mrf.mxu0 }
 0x237   : > { %v2258_v61 = vpop.f32.mrf.mxu2  ;;  %v2305_v37 = vmul.f32 %v4258_v52, %v4258_v52 }
 0x238   : > { %v2215_v62 = vadd.f32 %v2199_v41, %v2155_v33 }
 0x239   : > { %2316 = vadd.xlane.f32.xlu1 %v2305_v37  ;;  %v2202_v3 = vpop.f32.mrf.mxu1 }
 0x23a   : > { %v2274_v48 = vadd.f32 %v2258_v61, %v2215_v62 }
 0x23b   : > { %v2085_v55 = vpop.f32.mrf.mxu3 }
 0x23c   : > { %v2290_v44 = vmul.f32 0.2, %v2274_v48  ;;  %v2099_v20 = vadd.f32 %v2085_v55, %v2040_v59  ;;  %vm2282_vm8 = vcmp.gt.f32.partialorder %v2274_v48, 0.0 }
 0x23e   : > { %v2156_v39 = vadd.f32 %v2142_v18, %v2099_v20  ;;  %v4267_v42 = vsel %vm2282_vm8, %v2274_v48, %v2290_v44  ;;  %v2145_v29 = vpop.f32.mrf.mxu0 }
 0x23f   : > { %v2261_v22 = vpop.f32.mrf.mxu2  ;;  %v2306_v16 = vmul.f32 %v4267_v42, %v4267_v42 }
 0x240   : > { %v2216_v10 = vadd.f32 %v2202_v3, %v2156_v39 }
 0x241   : > { %2318 = vadd.xlane.f32.xlu2 %v2306_v16  ;;  %v2205_v56 = vpop.f32.mrf.mxu1 }
 0x242   : > { %v2275_v25 = vadd.f32 %v2261_v22, %v2216_v10 }
 0x243   : > { %v2088_v30 = vpop.f32.mrf.mxu3 }
 0x244   : > { %v2291_v12 = vmul.f32 0.2, %v2275_v25  ;;  %v2100_v28 = vadd.f32 %v2088_v30, %v2041_v51  ;;  %vm2283_vm9 = vcmp.gt.f32.partialorder %v2275_v25, 0.0 }
 0x246   : > { %v2157_v6 = vadd.f32 %v2145_v29, %v2100_v28  ;;  %v4274_v27 = vsel %vm2283_vm9, %v2275_v25, %v2291_v12  ;;  %v2148_v4 = vpop.f32.mrf.mxu0 }
 0x247   : > { %v2264_v57 = vpop.f32.mrf.mxu2  ;;  %v2307_v21 = vmul.f32 %v4274_v27, %v4274_v27 }
 0x248   : > { %v2217_v8 = vadd.f32 %v2205_v56, %v2157_v6 }
 0x249   : > { %2320 = vadd.xlane.f32.xlu2 %v2307_v21  ;;  %v2208_v2 = vpop.f32.mrf.mxu1 }
 0x24a   : > { %v2276_v53 = vadd.f32 %v2264_v57, %v2217_v8 }
 0x24b   : > { %v2091_v63 = vpop.f32.mrf.mxu3 }
 0x24c   : > { %v2292_v31 = vmul.f32 0.2, %v2276_v53  ;;  %v2101_v38 = vadd.f32 %v2091_v63, %v2042_v1  ;;  %vm2284_vm10 = vcmp.gt.f32.partialorder %v2276_v53, 0.0 }
 0x24e   : > { %v2158_v19 = vadd.f32 %v2148_v4, %v2101_v38  ;;  %v4279_v49 = vsel %vm2284_vm10, %v2276_v53, %v2292_v31 }
 0x24f   : > { %v2267_v32 = vpop.f32.mrf.mxu2  ;;  %v2308_v54 = vmul.f32 %v4279_v49, %v4279_v49 }
 0x250   : > { %v2218_v13 = vadd.f32 %v2208_v2, %v2158_v19 }
 0x251   : > { %2322 = vadd.xlane.f32.xlu0 %v2308_v54 }
 0x252   : > { %v2277_v60 = vadd.f32 %v2267_v32, %v2218_v13 }
 0x254   : > { %v2293_v50 = vmul.f32 0.2, %v2277_v60  ;;  %vm2285_vm11 = vcmp.gt.f32.partialorder %v2277_v60, 0.0 }
 0x256   : > { %v4283_v9 = vsel %vm2285_vm11, %v2277_v60, %v2293_v50 }
 0x257   : > { %v2309_v40 = vmul.f32 %v4283_v9, %v4283_v9 }
 0x259   : > { %2324 = vadd.xlane.f32.xlu1 %v2309_v40 }
 0x294   : > { %v2311_v17 = vpop.xlane.xlu0 %2310 }
 0x295   : > { %v2326_v47 = vmul.f32 0.125, %v2311_v17 }
 0x297   : > { %v2334_v41 = vadd.f32 1e-08, %v2326_v47 }
 0x299   : > { %2948 = vrsqrt.f32 %v2334_v41  ;;  %vm2348_vm13 = vweird.f32 %v2334_v41 }
 0x29c   : > { %v2313_v45 = vpop.xlane.xlu0 %2312 }
 0x29d   : > { %v2327_v14 = vmul.f32 0.125, %v2313_v45 }
 0x29f   : > { %v2949_v5 = vpop.eup %2948  ;;  %v2335_v35 = vadd.f32 1e-08, %v2327_v14 }
 0x2a0   : > { %v2343_v11 = vmul.f32 %v2949_v5, %v2334_v41  ;;  %vm2349_vm12 = vweird.f32 %v2949_v5 }
 0x2a1   : > { %2950 = vrsqrt.f32 %v2335_v35  ;;  %vm2350_vm14 = vmor %vm2348_vm13, %vm2349_vm12  ;;  %vm2358_vm0 = vweird.f32 %v2335_v35 }
 0x2a2   : > { %v2344_v43 = vmul.f32 %v2949_v5, %v2343_v11 }
 0x2a4   : > { %v2345_v26 = vmul.f32 0.5, %v2344_v43  ;;  %v2315_v0 = vpop.xlane.xlu1 %2314 }
 0x2a5   : > { %v2328_v33 = vmul.f32 0.125, %v2315_v0 }
 0x2a6   : > { %v2346_v61 = vsub.f32 1.5, %v2345_v26 }
 0x2a7   : > { %v2951_v37 = vpop.eup %2950  ;;  %v2336_v18 = vadd.f32 1e-08, %v2328_v33 }
 0x2a8   : > { %v2347_v62 = vmul.f32 %v2949_v5, %v2346_v61  ;;  %v2353_v3 = vmul.f32 %v2951_v37, %v2335_v35  ;;  %vm2359_vm15 = vweird.f32 %v2951_v37 }
 0x2a9   : > { %2952 = vrsqrt.f32 %v2336_v18  ;;  %vm2360_vm1 = vmor %vm2358_vm0, %vm2359_vm15  ;;  %vm2368_vm3 = vweird.f32 %v2336_v18 }
 0x2aa   : > { %v2351_v59 = vsel %vm2350_vm14, %v2949_v5, %v2347_v62  ;;  %v2354_v58 = vmul.f32 %v2951_v37, %v2353_v3 }
 0x2ab   : > { %v2422_v48 = vmul.f32 %v2351_v59, %v4235_v46 }
 0x2ac   : > { %v2355_v55 = vmul.f32 0.5, %v2354_v58  ;;  %v2317_v44 = vpop.xlane.xlu1 %2316 }
 0x2ad   : > { %2430 = vst [vmem:[%s4291_s17] sm:$0xff] %v2422_v48  ;;  %v2329_v20 = vmul.f32 0.125, %v2317_v44 }
 0x2ae   : > { %v2356_v36 = vsub.f32 1.5, %v2355_v55 }
 0x2af   : > { %v2953_v34 = vpop.eup %2952  ;;  %v2337_v39 = vadd.f32 1e-08, %v2329_v20 }
 0x2b0   : > { %v2357_v22 = vmul.f32 %v2951_v37, %v2356_v36  ;;  %v2363_v16 = vmul.f32 %v2953_v34, %v2336_v18  ;;  %vm2369_vm2 = vweird.f32 %v2953_v34 }
 0x2b1   : > { %2954 = vrsqrt.f32 %v2337_v39  ;;  %vm2370_vm4 = vmor %vm2368_vm3, %vm2369_vm2  ;;  %vm2378_vm6 = vweird.f32 %v2337_v39 }
 0x2b2   : > { %v2361_v10 = vsel %vm2360_vm1, %v2951_v37, %v2357_v22  ;;  %v2364_v29 = vmul.f32 %v2953_v34, %v2363_v16 }
 0x2b3   : > { %v2423_v46 = vmul.f32 %v2361_v10, %v4240_v23 }
 0x2b4   : > { %v2365_v51 = vmul.f32 0.5, %v2364_v29  ;;  %v2319_v24 = vpop.xlane.xlu2 %2318 }
 0x2b5   : > { %2431 = vst [vmem:[%s4291_s17 + $0x8] sm:$0xff] %v2423_v46  ;;  %v2330_v25 = vmul.f32 0.125, %v2319_v24 }
 0x2b6   : > { %v2366_v30 = vsub.f32 1.5, %v2365_v51 }
 0x2b7   : > { %v2955_v56 = vpop.eup %2954  ;;  %v2338_v12 = vadd.f32 1e-08, %v2330_v25 }
 0x2b8   : > { %v2367_v28 = vmul.f32 %v2953_v34, %v2366_v30  ;;  %v2373_v7 = vmul.f32 %v2955_v56, %v2337_v39  ;;  %vm2379_vm5 = vweird.f32 %v2955_v56 }
 0x2b9   : > { %2956 = vrsqrt.f32 %v2338_v12  ;;  %vm2380_vm7 = vmor %vm2378_vm6, %vm2379_vm5  ;;  %vm2388_vm9 = vweird.f32 %v2338_v12 }
 0x2ba   : > { %v2371_v6 = vsel %vm2370_vm4, %v2953_v34, %v2367_v28  ;;  %v2374_v57 = vmul.f32 %v2955_v56, %v2373_v7 }
 0x2bb   : > { %v2424_v21 = vmul.f32 %v2371_v6, %v4249_v15 }
 0x2bc   : > { %v2375_v8 = vmul.f32 0.5, %v2374_v57  ;;  %v2321_v23 = vpop.xlane.xlu2 %2320 }
 0x2bd   : > { %2432 = vst [vmem:[%s4291_s17 + $0x10] sm:$0xff] %v2424_v21  ;;  %v2331_v1 = vmul.f32 0.125, %v2321_v23 }
 0x2be   : > { %v2376_v53 = vsub.f32 1.5, %v2375_v8 }
 0x2bf   : > { %v2957_v63 = vpop.eup %2956  ;;  %v2339_v4 = vadd.f32 1e-08, %v2331_v1 }
 0x2c0   : > { %v2377_v31 = vmul.f32 %v2955_v56, %v2376_v53  ;;  %v2383_v38 = vmul.f32 %v2957_v63, %v2338_v12  ;;  %vm2389_vm8 = vweird.f32 %v2957_v63 }
 0x2c1   : > { %2958 = vrsqrt.f32 %v2339_v4  ;;  %vm2390_vm10 = vmor %vm2388_vm9, %vm2389_vm8  ;;  %vm2398_vm12 = vweird.f32 %v2339_v4 }
 0x2c2   : > { %v2381_v2 = vsel %vm2380_vm7, %v2955_v56, %v2377_v31  ;;  %v2384_v19 = vmul.f32 %v2957_v63, %v2383_v38 }
 0x2c3   : > { %v2425_v32 = vmul.f32 %v2381_v2, %v4258_v52 }
 0x2c4   : > { %v2385_v54 = vmul.f32 0.5, %v2384_v19  ;;  %v2323_v15 = vpop.xlane.xlu0 %2322 }
 0x2c5   : > { %2433 = vst [vmem:[%s4291_s17 + $0x18] sm:$0xff] %v2425_v32  ;;  %v2332_v13 = vmul.f32 0.125, %v2323_v15 }
 0x2c6   : > { %v2386_v60 = vsub.f32 1.5, %v2385_v54 }
 0x2c7   : > { %v2959_v50 = vpop.eup %2958  ;;  %v2340_v40 = vadd.f32 1e-08, %v2332_v13 }
 0x2c8   : > { %v2387_v17 = vmul.f32 %v2957_v63, %v2386_v60  ;;  %v2393_v47 = vmul.f32 %v2959_v50, %v2339_v4  ;;  %vm2399_vm11 = vweird.f32 %v2959_v50 }
 0x2c9   : > { %2960 = vrsqrt.f32 %v2340_v40  ;;  %vm2400_vm13 = vmor %vm2398_vm12, %vm2399_vm11  ;;  %vm2408_vm15 = vweird.f32 %v2340_v40 }
 0x2ca   : > { %v2391_v41 = vsel %vm2390_vm10, %v2957_v63, %v2387_v17  ;;  %v2394_v45 = vmul.f32 %v2959_v50, %v2393_v47 }
 0x2cb   : > { %v2426_v14 = vmul.f32 %v2391_v41, %v4267_v42 }
 0x2cc   : > { %v2395_v5 = vmul.f32 0.5, %v2394_v45  ;;  %v2325_v52 = vpop.xlane.xlu1 %2324 }
 0x2cd   : > { %2434 = vst [vmem:[%s4291_s17 + $0x20] sm:$0xff] %v2426_v14  ;;  %v2333_v35 = vmul.f32 0.125, %v2325_v52 }
 0x2ce   : > { %v2396_v11 = vsub.f32 1.5, %v2395_v5 }
 0x2cf   : > { %v2961_v43 = vpop.eup %2960  ;;  %v2341_v26 = vadd.f32 1e-08, %v2333_v35 }
 0x2d0   : > { %v2397_v0 = vmul.f32 %v2959_v50, %v2396_v11  ;;  %v2403_v33 = vmul.f32 %v2961_v43, %v2340_v40  ;;  %vm2409_vm14 = vweird.f32 %v2961_v43 }
 0x2d1   : > { %2962 = vrsqrt.f32 %v2341_v26  ;;  %vm2410_vm0 = vmor %vm2408_vm15, %vm2409_vm14  ;;  %vm2418_vm2 = vweird.f32 %v2341_v26 }
 0x2d2   : > { %v2401_v61 = vsel %vm2400_vm13, %v2959_v50, %v2397_v0  ;;  %v2404_v37 = vmul.f32 %v2961_v43, %v2403_v33 }
 0x2d3   : > { %v2427_v42 = vmul.f32 %v2401_v61, %v4274_v27 }
 0x2d4   : > { %v2405_v18 = vmul.f32 0.5, %v2404_v37 }
 0x2d5   : > { %2435 = vst [vmem:[%s4291_s17 + $0x28] sm:$0xff] %v2427_v42 }
 0x2d6   : > { %v2406_v62 = vsub.f32 1.5, %v2405_v18 }
 0x2d7   : > { %v2963_v3 = vpop.eup %2962 }
 0x2d8   : > { %v2407_v59 = vmul.f32 %v2961_v43, %v2406_v62  ;;  %v2413_v58 = vmul.f32 %v2963_v3, %v2341_v26  ;;  %vm2419_vm1 = vweird.f32 %v2963_v3 }
 0x2d9   : > { %vm2420_vm3 = vmor %vm2418_vm2, %vm2419_vm1 }
 0x2da   : > { %v2411_v48 = vsel %vm2410_vm0, %v2961_v43, %v2407_v59  ;;  %v2414_v55 = vmul.f32 %v2963_v3, %v2413_v58 }
 0x2db   : > { %v2428_v27 = vmul.f32 %v2411_v48, %v4279_v49 }
 0x2dc   : > { %v2415_v44 = vmul.f32 0.5, %v2414_v55 }
 0x2dd   : > { %2436 = vst [vmem:[%s4291_s17 + $0x30] sm:$0xff] %v2428_v27 }
 0x2de   : > { %v2416_v20 = vsub.f32 1.5, %v2415_v44 }
 0x2e0   : > { %v2417_v36 = vmul.f32 %v2963_v3, %v2416_v20 }
 0x2e2   : > { %v2421_v34 = vsel %vm2420_vm3, %v2963_v3, %v2417_v36 }
 0x2e3   : > { %v2429_v49 = vmul.f32 %v2421_v34, %v4283_v9 }
 0x2e5   : > { %2437 = vst [vmem:[%s4291_s17 + $0x38] sm:$0xff] %v2429_v49 }
 0x2e6   : > { %2991 = shalt.err (!%p2988_p10)
}
 0x2e7   : > { %s3060_s13 = smov 128   ;;  %s3061_s17 = smov 8  }
 0x2e8   : > { %2874 = dma.vmem_to_hbm [thread:$0]  (%p3143_p3), %s2454_s12, 1024, %s2456_s15, %s2439_s8, %s3060_s13, %s3060_s13, %s3061_s17  }
 0x2e9 PF: > { %p2880_p11 = scmp.ge.s32.totalorder %s3058_s25, 2  ;;  %s2470_s22 = sand.u32 1, %s3030_s18  }
 0x2ea   : > { %s2471_s10 = scalar_lea.sflag [#allocation3], %s2470_s22 }
 0x2eb   : > { %p2877_p12 = pnand %p2880_p11, %p3152_p8 }
 0x2ed   : > { %p2878_p13 = pneg %p2877_p12 }
 0x2ef   : > { %3025 = dma.done.wait (%p2878_p13), %s2471_s10, 1024  }
 0x2f0   : > { %3027 = vsyncadd (%p2878_p13), %s2471_s10, 4294966272  ;;  %s18_s25 = sadd.s32 1, %s3058_s25   ;;  %s4362_s18 = smov %s3034_s19 }
 0x2f1   : > { %p15_p0 = scmp.ge.s32.totalorder %s18_s25, 18   ;;  %s4363_s19 = smov %s3038_s20 }
 0x2f2   : > { %s4364_s20 = smov %s3161_s11  ;;  %s4365_s21 = smov %s3050_s23 }
 0x2f3   : > { %s4366_s22 = smov %s3054_s24  ;;  %s4367_s23 = smov %s4370_s28 }
 0x2f4   : > { %s4368_s24 = smov %s4374_s29  ;;  %17 = sbr.rel (!%p15_p0) target bundleno = 5 (0x5), region = 107 }
 0x2f9   :  { %2477 = vsyncpa [#allocation3], 1 }
 0x2fa   :  { %2479 = vsyncpa [#allocation3 + $0x1], 1 }

</bundles_post_ra>
